<compile_context>
chip_gen: v7x
topology: tpu7x:2x2x1
jax: 0.10.0
libtpu: 0.0.40
codegen_flags: <defaults>
</compile_context>

<pallas_src>
import functools

import jax
import jax.numpy as jnp
from jax.experimental import pallas as pl
from jax.experimental.pallas import tpu as pltpu


def _ece_partial_kernel(x_ref, labels_ref, out_ref, *, n_bins: int, logit: bool,
                        n_rows: int, nb_pad: int, tile_n: int,
                        steps_per_core: int):
    c = pl.program_id(0)          # "parallel" axis (one output block per core)
    i = pl.program_id(1)          # "arbitrary" reduction axis

    @pl.when(i == 0)
    def _init():
        out_ref[...] = jnp.zeros_like(out_ref)

    x = x_ref[...].astype(jnp.float32)                    # (tile_n, C) f32
    m = jnp.max(x, axis=1, keepdims=True)                 # (tile_n, 1)

    if logit:
        # max(softmax(x)) == exp(0) / sum(exp(x - m)) == 1 / sum(exp(x - m)).
        conf = 1.0 / jnp.sum(jnp.exp(x - m), axis=1, keepdims=True)
    else:
        conf = m

    # First-index argmax (matches torch.max tie-breaking); softmax is monotone so
    # comparing raw logits against the row max gives the same tie set.
    tn, C = x_ref.shape
    col = jax.lax.broadcasted_iota(jnp.int32, (tn, C), 1)
    pred = jnp.min(jnp.where(x >= m, col, C), axis=1, keepdims=True)
    hit = (pred == labels_ref[...]).astype(jnp.float32)   # (tile_n, 1)

    # Mask padded / out-of-range tail rows: conf -> 0 => bin id -1 => the row
    # lands in no bin (count/hit/conf sums untouched; also NaN-safe).
    t = c * steps_per_core + i                            # global (unclamped) tile idx
    row = jax.lax.broadcasted_iota(jnp.int32, (tn, 1), 0) + t * tile_n
    conf = jnp.where(row < n_rows, conf, 0.0)

    # One-hot bin membership with a single compare:
    #   bin k  <=>  k/n < conf <= (k+1)/n  <=>  ceil(conf*n) - 1 == k.
    # conf == 0 -> -1 (no bin); conf > 1 -> >= n_bins (padded bins, dropped later).
    bid = (jnp.ceil(conf * jnp.float32(n_bins)) - 1.0).astype(jnp.int32)
    bins = jax.lax.broadcasted_iota(jnp.int32, (1, nb_pad), 1)
    in_bin = (bid == bins).astype(jnp.float32)            # (tile_n, nb_pad)

    # Stats columns [1, hit, conf, 0...] -> (tile_n, 8); contract rows on the MXU.
    col8 = jax.lax.broadcasted_iota(jnp.int32, (tn, 8), 1)
    stats = jnp.where(col8 == 0, jnp.float32(1.0), jnp.float32(0.0))
    stats = jnp.where(col8 == 1, hit, stats)
    stats = jnp.where(col8 == 2, conf, stats)

    # (8, nb_pad) partial = [count; hit_sum; conf_sum; 0...].  Both operands are
    # contracted on dim 0; any relayout hits only the tiny stats operand.
    partial = jax.lax.dot_general(
        stats, in_bin,
        dimension_numbers=(((0,), (0,)), ((), ())),
        preferred_element_type=jnp.float32)
    out_ref[...] += partial[None, :, :]


def _vmem_capacity_bytes() -> int:
    try:
        return int(pltpu.get_tpu_info().vmem_capacity_bytes)
    except Exception:
        return 64 * 1024 * 1024   # conservative: v7x per-TC physical VMEM


def _choose_tile_n(N: int, C: int, itemsize: int) -> int:
    """Byte-budgeted row tile: big enough to be HBM-roofline-bound, VMEM-safe."""
    c_pad = max(128, ((C + 127) // 128) * 128)
    phys = _vmem_capacity_bytes()
    # ~45% of physical VMEM, capped at 48 MiB (leaves pipeline/compiler headroom
    # on 128 MiB parts and keeps v7x's 64 MiB per-TC VMEM safe).
    budget = min(int(phys * 0.45), 48 * 1024 * 1024)
    per_row = (2 * c_pad * itemsize          # 2x pipelined logits blocks (native dtype)
               + 2 * 128 * 4                 # 2x pipelined labels blocks, lane-padded to 128
               + 4 * (3 * c_pad + 2 * 128))  # f32 temporaries: cast/exp/select, in_bin, stats
    tile = budget // per_row
    tile = max(8, min(tile, 32 * 1024))      # keep per-step DMAs / unroll sane
    tile = min(tile, ((N + 7) // 8) * 8)
    return max(8, (tile // 8) * 8)


def ece_loss(inputs: jax.Array, labels: jax.Array, *, n_bins: int = 10,
             logit: bool = True, tile_n: int | None = None) -> jax.Array:
    """Pallas implementation of ECELoss.forward.  Returns shape (1,) float32."""
    N, C = inputs.shape
    labels2d = labels.reshape(N, 1).astype(jnp.int32)

    nb_pad = max(128, ((n_bins + 127) // 128) * 128)
    if tile_n is None:
        tile_n = _choose_tile_n(N, C, inputs.dtype.itemsize)
    else:
        tile_n = max(8, ((min(tile_n, ((N + 7) // 8) * 8) + 7) // 8) * 8)

    num_tiles = pl.cdiv(N, tile_n)
    steps = pl.cdiv(num_tiles, 2)            # reduction steps per core
    last_tile = num_tiles - 1

    # Clamp the DMA source block so the read stays in bounds when 2*steps exceeds
    # num_tiles; the in-kernel row mask (built from the UNCLAMPED tile index)
    # zeroes any contribution from such steps.
    def block_map(c, i):
        return (jnp.minimum(c * steps + i, last_tile), 0)

    kernel = functools.partial(_ece_partial_kernel, n_bins=n_bins, logit=logit,
                               n_rows=N, nb_pad=nb_pad, tile_n=tile_n,
                               steps_per_core=steps)

    phys = _vmem_capacity_bytes()
    vmem_limit = int(max(32 * 1024 * 1024,
                         min(phys - 8 * 1024 * 1024, 96 * 1024 * 1024)))

    partials = pl.pallas_call(
        kernel,
        out_shape=jax.ShapeDtypeStruct((2, 8, nb_pad), jnp.float32),
        grid_spec=pltpu.PrefetchScalarGridSpec(
            num_scalar_prefetch=0,
            grid=(2, steps),
            in_specs=[
                pl.BlockSpec((tile_n, C), block_map),
                pl.BlockSpec((tile_n, 1), block_map),
            ],
            out_specs=pl.BlockSpec((1, 8, nb_pad), lambda c, i: (c, 0, 0)),
        ),
        compiler_params=pltpu.CompilerParams(
            dimension_semantics=("parallel", "arbitrary"),
            vmem_limit_bytes=vmem_limit,
        ),
    )(inputs, labels2d)

    # Tiny finalize in the wrapper: combine the per-core partials and form ECE.
    tot = jnp.sum(partials, axis=0)                        # (8, nb_pad)
    counts = tot[0, :n_bins]
    hit_sum = tot[1, :n_bins]
    conf_sum = tot[2, :n_bins]
    safe = jnp.maximum(counts, 1.0)
    gap = jnp.abs(conf_sum / safe - hit_sum / safe)
    ece = jnp.sum(jnp.where(counts > 0.0, gap * counts / jnp.float32(N), 0.0))
    return ece.reshape(1)


def _ece_reference(inputs, labels, n_bins=10, logit=True):
    """Pure-JAX reference mirroring the PyTorch semantics."""
    probs = jax.nn.softmax(inputs.astype(jnp.float32), axis=1) if logit else inputs
    conf = jnp.max(probs, axis=1)
    pred = jnp.argmax(probs, axis=1)
    acc = (pred == labels).astype(jnp.float32)
    N = inputs.shape[0]
    ece = jnp.zeros((1,), jnp.float32)
    bounds = jnp.linspace(0.0, 1.0, n_bins + 1)
    for k in range(n_bins):
        in_bin = (conf > bounds[k]) & (conf <= bounds[k + 1])
        count = jnp.sum(in_bin.astype(jnp.float32))
        prop = count / N
        acc_in = jnp.sum(acc * in_bin) / jnp.maximum(count, 1.0)
        conf_in = jnp.sum(conf * in_bin) / jnp.maximum(count, 1.0)
        ece = ece + jnp.where(count > 0, jnp.abs(conf_in - acc_in) * prop, 0.0)
    return ece


if __name__ == "__main__":
    key = jax.random.PRNGKey(0)
    k1, k2 = jax.random.split(key)

    N, C, N_BINS = 200, 16, 10
    logits = jax.random.normal(k1, (N, C), dtype=jnp.float32) * 2.0
    labels = jax.random.randint(k2, (N,), 0, C, dtype=jnp.int32)

    # 1) default (byte-budgeted) tiling, logit path
    ece = ece_loss(logits, labels, n_bins=N_BINS, logit=True)
    jax.block_until_ready(ece)
    ref = _ece_reference(logits, labels, n_bins=N_BINS, logit=True)
    assert jnp.allclose(ece, ref, atol=1e-5), (ece, ref)

    # 2) force a multi-tile grid with a ragged tail (tests masking + per-core accumulators)
    ece_tiled = ece_loss(logits, labels, n_bins=N_BINS, logit=True, tile_n=64)
    jax.block_until_ready(ece_tiled)
    assert jnp.allclose(ece_tiled, ref, atol=1e-5), (ece_tiled, ref)

    # 3) probability-input path (logit=False)
    probs = jax.nn.softmax(logits, axis=1)
    ece_p = ece_loss(probs, labels, n_bins=N_BINS, logit=False, tile_n=64)
    jax.block_until_ready(ece_p)
    ref_p = _ece_reference(probs, labels, n_bins=N_BINS, logit=False)
    assert jnp.allclose(ece_p, ref_p, atol=1e-5), (ece_p, ref_p)

    print("KERNEL_OK")
</pallas_src>

<mosaic_0001>
module attributes {stable_mosaic.version = 11 : i64} {
  func.func @_ece_partial_kernel(%arg0: i32, %arg1: i32, %arg2: memref<200x16xf32, #tpu.memory_space<vmem>>, %arg3: memref<200x1xi32, #tpu.memory_space<vmem>>, %arg4: memref<1x8x128xf32, #tpu.memory_space<vmem>>) attributes {dimension_semantics = [#tpu.dimension_semantics<parallel>, #tpu.dimension_semantics<arbitrary>], iteration_bounds = array<i64: 2, 1>, scalar_prefetch = 0 : i64, scratch_operands = 0 : i64, tpu.core_type = #tpu.core_type<tc>, window_params = [{transform_indices = @transform_0, window_bounds = array<i64: 200, 16>}, {transform_indices = @transform_1, window_bounds = array<i64: 200, 1>}, {transform_indices = @transform_2, window_bounds = array<i64: 1, 8, 128>}]} {
    %c0_i32 = arith.constant 0 : i32
    %0 = arith.cmpi eq, %arg1, %c0_i32 : i32
    %1 = arith.extui %0 : i1 to i32
    %c0_i32_0 = arith.constant 0 : i32
    %2 = arith.cmpi ne, %1, %c0_i32_0 : i32
    scf.if %2 {
      %cst_22 = arith.constant 0.000000e+00 : f32
      %67 = vector.broadcast %cst_22 : f32 to vector<1x8x128xf32>
      %c0_23 = arith.constant 0 : index
      %c0_24 = arith.constant 0 : index
      %c0_25 = arith.constant 0 : index
      %68 = vector.load %arg4[%c0_23, %c0_24, %c0_25] : memref<1x8x128xf32, #tpu.memory_space<vmem>>, vector<1x8x128xf32>
      tpu.vector_store %arg4[%c0_23, %c0_24, %c0_25], %67 {strides = array<i32>} : memref<1x8x128xf32, #tpu.memory_space<vmem>>, vector<1x8x128xf32>,
    } else {
    }
    %c0 = arith.constant 0 : index
    %c0_1 = arith.constant 0 : index
    %3 = vector.load %arg2[%c0, %c0_1] : memref<200x16xf32, #tpu.memory_space<vmem>>, vector<200x16xf32>
    %cst = arith.constant dense<0xFF800000> : vector<200xf32>
    %4 = vector.multi_reduction <maximumf>, %3, %cst [1] : vector<200x16xf32> to vector<200xf32>
    %5 = vector.shape_cast %4 : vector<200xf32> to vector<200x1xf32>
    %6 = vector.broadcast %5 : vector<200x1xf32> to vector<200x16xf32>
    %7 = arith.subf %3, %6 : vector<200x16xf32>
    %8 = math.exp %7 : vector<200x16xf32>
    %cst_2 = arith.constant dense<0.000000e+00> : vector<200xf32>
    %9 = vector.multi_reduction <add>, %8, %cst_2 [1] : vector<200x16xf32> to vector<200xf32>
    %10 = vector.shape_cast %9 : vector<200xf32> to vector<200x1xf32>
    %cst_3 = arith.constant 1.000000e+00 : f32
    %11 = vector.broadcast %cst_3 : f32 to vector<200x1xf32>
    %12 = arith.divf %11, %10 : vector<200x1xf32>
    %13 = tpu.iota {dimensions = array<i32: 1>} : vector<200x16xi32>
    %14 = vector.broadcast %5 : vector<200x1xf32> to vector<200x16xf32>
    %15 = arith.cmpf oge, %3, %14 : vector<200x16xf32>
    %c16_i32 = arith.constant 16 : i32
    %16 = vector.broadcast %c16_i32 : i32 to vector<200x16xi32>
    %17 = arith.select %15, %13, %16 : vector<200x16xi1>, vector<200x16xi32>
    %cst_4 = arith.constant dense<2147483647> : vector<200xi32>
    %18 = vector.multi_reduction <minsi>, %17, %cst_4 [1] : vector<200x16xi32> to vector<200xi32>
    %19 = vector.shape_cast %18 : vector<200xi32> to vector<200x1xi32>
    %c0_5 = arith.constant 0 : index
    %c0_6 = arith.constant 0 : index
    %20 = vector.load %arg3[%c0_5, %c0_6] : memref<200x1xi32, #tpu.memory_space<vmem>>, vector<200x1xi32>
    %21 = arith.cmpi eq, %19, %20 : vector<200x1xi32>
    %22 = arith.extui %21 : vector<200x1xi1> to vector<200x1xi32>
    %23 = arith.sitofp %22 : vector<200x1xi32> to vector<200x1xf32>
    %c1_i32 = arith.constant 1 : i32
    %24 = arith.muli %arg0, %c1_i32 : i32
    %25 = arith.addi %24, %arg1 : i32
    %26 = tpu.iota {dimensions = array<i32: 0>} : vector<200x1xi32>
    %c200_i32 = arith.constant 200 : i32
    %27 = arith.muli %25, %c200_i32 : i32
    %28 = vector.broadcast %27 : i32 to vector<200x1xi32>
    %29 = arith.addi %26, %28 : vector<200x1xi32>
    %c200_i32_7 = arith.constant 200 : i32
    %30 = vector.broadcast %c200_i32_7 : i32 to vector<200x1xi32>
    %31 = arith.cmpi slt, %29, %30 : vector<200x1xi32>
    %cst_8 = arith.constant 0.000000e+00 : f32
    %32 = vector.broadcast %cst_8 : f32 to vector<200x1xf32>
    %33 = arith.select %31, %12, %32 : vector<200x1xi1>, vector<200x1xf32>
    %cst_9 = arith.constant 1.000000e+01 : f32
    %34 = vector.broadcast %cst_9 : f32 to vector<200x1xf32>
    %35 = arith.mulf %33, %34 : vector<200x1xf32>
    %36 = math.ceil %35 : vector<200x1xf32>
    %cst_10 = arith.constant 1.000000e+00 : f32
    %37 = vector.broadcast %cst_10 : f32 to vector<200x1xf32>
    %38 = arith.subf %36, %37 : vector<200x1xf32>
    %39 = arith.fptosi %38 : vector<200x1xf32> to vector<200x1xi32>
    %40 = tpu.iota {dimensions = array<i32: 1>} : vector<1x128xi32>
    %41 = vector.broadcast %39 : vector<200x1xi32> to vector<200x128xi32>
    %42 = vector.broadcast %40 : vector<1x128xi32> to vector<200x128xi32>
    %43 = arith.cmpi eq, %41, %42 : vector<200x128xi32>
    %44 = arith.extui %43 : vector<200x128xi1> to vector<200x128xi32>
    %45 = arith.sitofp %44 : vector<200x128xi32> to vector<200x128xf32>
    %46 = tpu.iota {dimensions = array<i32: 1>} : vector<200x8xi32>
    %c0_i32_11 = arith.constant 0 : i32
    %47 = vector.broadcast %c0_i32_11 : i32 to vector<200x8xi32>
    %48 = arith.cmpi eq, %46, %47 : vector<200x8xi32>
    %cst_12 = arith.constant 1.000000e+00 : f32
    %cst_13 = arith.constant 0.000000e+00 : f32
    %49 = vector.broadcast %cst_12 : f32 to vector<200x8xf32>
    %50 = vector.broadcast %cst_13 : f32 to vector<200x8xf32>
    %51 = arith.select %48, %49, %50 : vector<200x8xi1>, vector<200x8xf32>
    %c1_i32_14 = arith.constant 1 : i32
    %52 = vector.broadcast %c1_i32_14 : i32 to vector<200x8xi32>
    %53 = arith.cmpi eq, %46, %52 : vector<200x8xi32>
    %54 = vector.shape_cast %23 : vector<200x1xf32> to vector<200x1xf32>
    %55 = vector.broadcast %54 : vector<200x1xf32> to vector<200x8xf32>
    %56 = arith.select %53, %55, %51 : vector<200x8xi1>, vector<200x8xf32>
    %c2_i32 = arith.constant 2 : i32
    %57 = vector.broadcast %c2_i32 : i32 to vector<200x8xi32>
    %58 = arith.cmpi eq, %46, %57 : vector<200x8xi32>
    %59 = vector.shape_cast %33 : vector<200x1xf32> to vector<200x1xf32>
    %60 = vector.broadcast %59 : vector<200x1xf32> to vector<200x8xf32>
    %61 = arith.select %58, %60, %56 : vector<200x8xi1>, vector<200x8xf32>
    %cst_15 = arith.constant dense<0.000000e+00> : vector<8x128xf32>
    %62 = tpu.matmul %61, %45, %cst_15 {dimension_numbers = #tpu.dot_dimension_numbers<[0], [0], [1], [1], [0, 1, 1, 1], [], []>} : vector<200x8xf32>, vector<200x128xf32>, vector<8x128xf32> -> vector<8x128xf32>
    %c0_16 = arith.constant 0 : index
    %c0_17 = arith.constant 0 : index
    %c0_18 = arith.constant 0 : index
    %63 = vector.load %arg4[%c0_16, %c0_17, %c0_18] : memref<1x8x128xf32, #tpu.memory_space<vmem>>, vector<1x8x128xf32>
    %64 = vector.shape_cast %62 : vector<8x128xf32> to vector<1x8x128xf32>
    %65 = arith.addf %63, %64 : vector<1x8x128xf32>
    %c0_19 = arith.constant 0 : index
    %c0_20 = arith.constant 0 : index
    %c0_21 = arith.constant 0 : index
    %66 = vector.load %arg4[%c0_19, %c0_20, %c0_21] : memref<1x8x128xf32, #tpu.memory_space<vmem>>, vector<1x8x128xf32>
    tpu.vector_store %arg4[%c0_19, %c0_20, %c0_21], %65 {strides = array<i32>} : memref<1x8x128xf32, #tpu.memory_space<vmem>>, vector<1x8x128xf32>,
    return
  }
  func.func @transform_0(%arg0: i32, %arg1: i32) -> (i32, i32) {
    %c1_i32 = arith.constant 1 : i32
    %0 = arith.muli %arg0, %c1_i32 : i32
    %1 = arith.addi %0, %arg1 : i32
    %c0_i32 = arith.constant 0 : i32
    %2 = arith.minsi %1, %c0_i32 : i32
    %c0_i32_0 = arith.constant 0 : i32
    %c0_i32_1 = arith.constant 0 : i32
    return %2, %c0_i32_0 : i32, i32
  }
  func.func @transform_1(%arg0: i32, %arg1: i32) -> (i32, i32) {
    %c1_i32 = arith.constant 1 : i32
    %0 = arith.muli %arg0, %c1_i32 : i32
    %1 = arith.addi %0, %arg1 : i32
    %c0_i32 = arith.constant 0 : i32
    %2 = arith.minsi %1, %c0_i32 : i32
    %c0_i32_0 = arith.constant 0 : i32
    %c0_i32_1 = arith.constant 0 : i32
    return %2, %c0_i32_0 : i32, i32
  }
  func.func @transform_2(%arg0: i32, %arg1: i32) -> (i32, i32, i32) {
    %c0_i32 = arith.constant 0 : i32
    %c0_i32_0 = arith.constant 0 : i32
    %c0_i32_1 = arith.constant 0 : i32
    return %arg0, %c0_i32, %c0_i32_0 : i32, i32, i32
  }
}

</mosaic_0001>

<bundles_post_ra>
// kernel: tpu_custom_call.1
= control target key start
LH: loop header
LB: loop body
LE: loop exit
PB: predicated region body
PF: predicated region fallthrough
CT: control target
= control target key end

     0   :  { %7 = vsyncpa [#allocation3], 0  ;;  %s3472_s0 = inlined_call_operand.vmem [shape: f32[200,16], index: 0, kind: input, shape index: {}]   ;;  %s3473_s1 = inlined_call_operand.vmem [shape: s32[200,1], index: 1, kind: input, shape index: {}]   ;;  %s3474_s2 = inlined_call_operand.hbm [shape: f32[2,8,128], index: 2, kind: output, shape index: {}]  }
   0x1   :  { %9 = vsyncpa [#allocation3 + $0x1], 0  ;;  %s2270_s9 = smov 0   ;;  %s2272_s10 = smov 0  }
   0x2   :  { %s2274_s11 = smov 0   ;;  %s2276_s12 = smov 0  }
   0x3   :  { %s2278_s13 = smov 0   ;;  %s2280_s14 = smov 0  }
   0x4 LB: > { %s1745_s15 = sadd.s32 4294967295, %s2247_s14   ;;  %s1746_s16 = sadd.s32 4294967294, %s2247_s14   ;;  %s2247_s14 = sphi %s2280_s14, %s15_s14   ;;  %s2243_s13 = sphi %s2278_s13, %s3589_s13   ;;  %s2239_s12 = sphi %s2276_s12, %s3588_s12   ;;  %s2235_s11 = sphi %s2274_s11, %s3587_s11   ;;  %s2231_s10 = sphi %s2272_s10, %s3586_s10   ;;  %s2227_s9 = sphi %s2270_s9, %s3585_s9  }
   0x5   : > { %s27_s17 = sadd.s32 1, %s2243_s13  ;;  %s98_s18 = sadd.s32 1, %s2235_s11 }
   0x6   : > { %p29_p0 = scmp.ge.s32.totalorder %s27_s17, 2  ;;  %p108_p1 = scmp.ne.s32.totalorder %s2235_s11, %s2231_s10 }
   0x7   : > { %p109_p2 = scmp.eq.s32.totalorder %s1745_s15, 1  ;;  %p114_p3 = scmp.ne.s32.totalorder %s2231_s10, %s2227_s9 }
   0x8   : > { %s3591_s17 = smov (%p29_p0, %s27_s17), 0  ;;  %p115_p5 = scmp.eq.s32.totalorder %s1746_s16, 1 }
   0x9   : > { %p2310_p4 = por %p109_p2, %p108_p1  ;;  %s95_s20 = ssub.s32 %s2243_s13, %s3591_s17 }
   0xa   : > { %p1749_p6 = scmp.ge.s32.totalorder %s2247_s14, 1  ;;  %p96_p7 = scmp.eq.s32.totalorder %s95_s20, 0 }
   0xb   : > { %p2317_p8 = por %p115_p5, %p114_p3  ;;  %p163_p9 = scmp.lt.s32.totalorder %s2247_s14, 3 }
   0xc   : > { %s2323_s22 = scalar_select %p96_p7, %s2235_s11, %s98_s18  }
   0xd   : > { %p164_p10 = pnand %p1749_p6, %p163_p9 }
   0xf   : > { %167 = sbr.rel (%p164_p10) target bundleno = 982 (0x3d6), region = 28 }
  0x16   : > { %p197_p11 = scmp.lt.s32.totalorder %s2239_s12, 0  ;;  %vm250_vm0 = vcmask 130048   ;;  %v3475_v50 = vlaneseq  ;;  %s1080_s29 = smul.u32 200, %s2239_s12 }
  0x17   : > { %s193_s5 = sand.u32 1, %s2231_s10   ;;  %s1855_s7 = sshll.u32 %s2239_s12, 7 }
  0x18   : > { %s198_s23 = scalar_select %p197_p11, %s2239_s12, 0  ;;  %v2463_v51 = vand.u32 127, %v3475_v50 }
  0x19   : > { %s1750_s6 = sshll.u32 %s193_s5, 3  ;;  %s3425_s20 = scalar_lea.hbm %s3474_s2, %s1855_s7 }
  0x1a   : > { %s199_s24 = smul.u32 25, %s198_s23  ;;  %3530 = vst [vmem:[#allocation21_spill] sm:$0xff] %v2463_v51  ;;  %s195_s8 = scalar_lea.vmem [#allocation2], %s1750_s6 }
  0x1b   : > { %s1666_s15 = sshll.u32 %s195_s8, 4  ;;  %s1653_s23 = scalar_lea.sflag [#allocation3], %s193_s5  ;;  %s3427_s15 = int_to_ptr.vmem [resolvable:$true] %s1666_s15 }
  0x1c   : > { %p200_p12 = scmp.lt.s32.totalorder %s199_s24, 24  ;;  %s2254_s12 = smov [#allocation2]  }
  0x1e   : > { %s3593_s24 = smov (!%p200_p12, %s199_s24), 24 }
  0x1f   : > { %s1751_s25 = sshll.u32 %s3593_s24, 3  ;;  %s2169_s24 = scalar_lea.vmem %s3427_s15, 128 }
  0x20   : > { %s2335_s28 = scalar_lea.vmem %s3472_s0, %s1751_s25  ;;  %s3006_s4 = scalar_lea.vmem %s3473_s1, %s1751_s25 }
  0x21   : > { %v2338_v0 = vld [vmem:[%s2335_s28] sm:$0xff]  ;;  %v2341_v1 = vld [vmem:[%s2335_s28 + $0x10] sm:$0xff]  ;;  %v2344_v2 = vld [vmem:[%s2335_s28 + $0x8] sm:$0xff]  ;;  %p2170_p13 = scmp.ne.s32.totalorder %s3427_s15, %s2169_s24  ;;  %s2173_s25 = sshll.u32 %s2254_s12, 4  ;;  %s2174_s25 = int_to_ptr.vmem [resolvable:$false] %s2173_s25 }
  0x22   : > { %v251_v3 = vsel %vm250_vm0, %v2338_v0, -inf  ;;  %v257_v4 = vsel %vm250_vm0, %v2341_v1, -inf  ;;  %v2351_v5 = vld [vmem:[%s2335_s28 + $0x18] sm:$0xff]  ;;  %v254_v6 = vsel %vm250_vm0, %v2344_v2, -inf  ;;  %v2358_v8 = vld [vmem:[%s2335_s28 + $0x20] sm:$0xff]  ;;  %v2361_v9 = vld [vmem:[%s2335_s28 + $0x28] sm:$0xff]  ;;  %p2176_p2 = scmp.lt.s32.totalorder %s3427_s15, %s2174_s25 }
  0x23   : > { %252 = vmax.xlane.f32.xlu0 %v251_v3  ;;  %258 = vmax.xlane.f32.xlu1 %v257_v4  ;;  %v260_v7 = vsel %vm250_vm0, %v2351_v5, -inf  ;;  %v263_v10 = vsel %vm250_vm0, %v2358_v8, -inf  ;;  %v266_v11 = vsel %vm250_vm0, %v2361_v9, -inf  ;;  %v2368_v12 = vld [vmem:[%s2335_s28 + $0x30] sm:$0xff]  ;;  %v2371_v13 = vld [vmem:[%s2335_s28 + $0x80] sm:$0xff]  ;;  %v2378_v16 = vld [vmem:[%s2335_s28 + $0x38] sm:$0xff]  ;;  %p2171_p0 = pnand %p2170_p13, %p2310_p4 }
  0x24   : > { %3514 = vst [vmem:[#allocation5_spill] sm:$0xff] %v2368_v12  ;;  %3515 = vst [vmem:[#allocation6_spill] sm:$0xff] %v2371_v13  ;;  %v269_v14 = vsel %vm250_vm0, %v2368_v12, -inf  ;;  %v299_v15 = vsel %vm250_vm0, %v2371_v13, -inf  ;;  %v2381_v17 = vld [vmem:[%s2335_s28 + $0x88] sm:$0xff]  ;;  %v272_v18 = vsel %vm250_vm0, %v2378_v16, -inf }
  0x25   : > { %3516 = vst [vmem:[#allocation7_spill] sm:$0xff] %v2378_v16  ;;  %3517 = vst [vmem:[#allocation8_spill] sm:$0xff] %v2381_v17  ;;  %v302_v19 = vsel %vm250_vm0, %v2381_v17, -inf  ;;  %v2388_v20 = vld [vmem:[%s2335_s28 + $0x40] sm:$0xff]  ;;  %v2391_v21 = vld [vmem:[%s2335_s28 + $0x90] sm:$0xff]  ;;  %p2172_p1 = pneg %p2171_p0  ;;  %s2175_s26 = scalar_lea.vmem %s2174_s25, 256 }
  0x26   : > { %3518 = vst [vmem:[#allocation9_spill] sm:$0xff] %v2388_v20  ;;  %3519 = vst [vmem:[#allocation10_spill] sm:$0xff] %v2391_v21  ;;  %v275_v22 = vsel %vm250_vm0, %v2388_v20, -inf  ;;  %v305_v23 = vsel %vm250_vm0, %v2391_v21, -inf  ;;  %v2398_v24 = vld [vmem:[%s2335_s28 + $0x48] sm:$0xff]  ;;  %v2401_v25 = vld [vmem:[%s2335_s28 + $0x98] sm:$0xff]  ;;  %p2177_p3 = scmp.lt.s32.totalorder %s2175_s26, %s2169_s24 }
  0x27   : > { %255 = vmax.xlane.f32.xlu0 %v254_v6  ;;  %261 = vmax.xlane.f32.xlu1 %v260_v7  ;;  %3520 = vst [vmem:[#allocation11_spill] sm:$0xff] %v2398_v24  ;;  %3521 = vst [vmem:[#allocation12_spill] sm:$0xff] %v2401_v25  ;;  %v278_v26 = vsel %vm250_vm0, %v2398_v24, -inf  ;;  %v308_v27 = vsel %vm250_vm0, %v2401_v25, -inf  ;;  %v2408_v28 = vld [vmem:[%s2335_s28 + $0x50] sm:$0xff]  ;;  %v2411_v29 = vld [vmem:[%s2335_s28 + $0xa0] sm:$0xff] }
  0x28   : > { %3522 = vst [vmem:[#allocation13_spill] sm:$0xff] %v2408_v28  ;;  %3523 = vst [vmem:[#allocation14_spill] sm:$0xff] %v2411_v29  ;;  %v281_v30 = vsel %vm250_vm0, %v2408_v28, -inf  ;;  %v311_v31 = vsel %vm250_vm0, %v2411_v29, -inf  ;;  %v2418_v32 = vld [vmem:[%s2335_s28 + $0x58] sm:$0xff]  ;;  %v2421_v33 = vld [vmem:[%s2335_s28 + $0xa8] sm:$0xff]  ;;  %p2178_p5 = por %p2177_p3, %p2176_p2 }
  0x29   : > { %3524 = vst [vmem:[#allocation15_spill] sm:$0xff] %v2418_v32  ;;  %3525 = vst [vmem:[#allocation16_spill] sm:$0xff] %v2421_v33  ;;  %v284_v34 = vsel %vm250_vm0, %v2418_v32, -inf  ;;  %v314_v35 = vsel %vm250_vm0, %v2421_v33, -inf  ;;  %v2428_v36 = vld [vmem:[%s2335_s28 + $0x60] sm:$0xff]  ;;  %v2431_v37 = vld [vmem:[%s2335_s28 + $0xb0] sm:$0xff] }
  0x2a   : > { %3526 = vst [vmem:[#allocation17_spill] sm:$0xff] %v2428_v36  ;;  %3527 = vst [vmem:[#allocation18_spill] sm:$0xff] %v2431_v37  ;;  %v287_v38 = vsel %vm250_vm0, %v2428_v36, -inf  ;;  %v317_v39 = vsel %vm250_vm0, %v2431_v37, -inf  ;;  %v2438_v40 = vld [vmem:[%s2335_s28 + $0x68] sm:$0xff]  ;;  %v2441_v41 = vld [vmem:[%s2335_s28 + $0xb8] sm:$0xff]  ;;  %p2179_p6 = pnand %p2178_p5, %p2172_p1 }
  0x2b   : > { %264 = vmax.xlane.f32.xlu0 %v263_v10  ;;  %267 = vmax.xlane.f32.xlu1 %v266_v11  ;;  %3528 = vst [vmem:[#allocation19_spill] sm:$0xff] %v2438_v40  ;;  %3529 = vst [vmem:[#allocation20_spill] sm:$0xff] %v2441_v41  ;;  %v290_v42 = vsel %vm250_vm0, %v2438_v40, -inf  ;;  %v320_v43 = vsel %vm250_vm0, %v2441_v41, -inf  ;;  %v2448_v44 = vld [vmem:[%s2335_s28 + $0x70] sm:$0xff]  ;;  %v2451_v45 = vld [vmem:[%s2335_s28 + $0xc0] sm:$0xff] }
  0x2c   : > { %v293_v46 = vsel %vm250_vm0, %v2448_v44, -inf  ;;  %v323_v47 = vsel %vm250_vm0, %v2451_v45, -inf  ;;  %v2458_v48 = vld [vmem:[%s2335_s28 + $0x78] sm:$0xff] }
  0x2d   : > { %v296_v49 = vsel %vm250_vm0, %v2458_v48, -inf }
  0x2f   : > { %270 = vmax.xlane.f32.xlu0 %v269_v14  ;;  %300 = vmax.xlane.f32.xlu1 %v299_v15 }
  0x33   : > { %273 = vmax.xlane.f32.xlu0 %v272_v18  ;;  %303 = vmax.xlane.f32.xlu1 %v302_v19 }
  0x37   : > { %276 = vmax.xlane.f32.xlu0 %v275_v22  ;;  %306 = vmax.xlane.f32.xlu1 %v305_v23 }
  0x3b   : > { %279 = vmax.xlane.f32.xlu0 %v278_v26  ;;  %309 = vmax.xlane.f32.xlu1 %v308_v27 }
  0x3f   : > { %282 = vmax.xlane.f32.xlu0 %v281_v30  ;;  %312 = vmax.xlane.f32.xlu1 %v311_v31 }
  0x43   : > { %285 = vmax.xlane.f32.xlu0 %v284_v34  ;;  %315 = vmax.xlane.f32.xlu1 %v314_v35 }
  0x47   : > { %288 = vmax.xlane.f32.xlu0 %v287_v38  ;;  %318 = vmax.xlane.f32.xlu1 %v317_v39 }
  0x4b   : > { %291 = vmax.xlane.f32.xlu0 %v290_v42  ;;  %321 = vmax.xlane.f32.xlu1 %v320_v43 }
  0x4f   : > { %294 = vmax.xlane.f32.xlu0 %v293_v46  ;;  %324 = vmax.xlane.f32.xlu1 %v323_v47 }
  0x53   : > { %297 = vmax.xlane.f32.xlu0 %v296_v49 }
  0xb0   : > { %v2465_v52 = vpop.xlane.xlu0 %252  ;;  %v2467_v53 = vpop.xlane.xlu1 %258 }
  0xb1   : > { %vm528_vm1 = vcmp.ge.f32.partialorder %v2338_v0, %v2465_v52  ;;  %vm530_vm2 = vcmp.ge.f32.partialorder %v2341_v1, %v2467_v53 }
  0xb2   : > { %v553_v54 = vsel %vm528_vm1, %v2463_v51, 16  ;;  %v555_v55 = vsel %vm530_vm2, %v2463_v51, 16 }
  0xb3   : > { %v2476_v56 = vsel %vm250_vm0, %v553_v54, 2147483647  ;;  %v2484_v60 = vsel %vm250_vm0, %v555_v55, 2147483647 }
  0xb4   : > { %v2478_v57 = vpop.xlane.xlu0 %255  ;;  %v2480_v58 = vpop.xlane.xlu1 %261  ;;  %v580_v59 = vshra.s32 %v2476_v56, 16  ;;  %v610_v62 = vshra.s32 %v2484_v60, 16 }
  0xb5   : > { %vm529_vm3 = vcmp.ge.f32.partialorder %v2344_v2, %v2478_v57  ;;  %vm531_vm4 = vcmp.ge.f32.partialorder %v2351_v5, %v2480_v58 }
  0xb6   : > { %v2490_v61 = vcvt.s32.f32 %v580_v59  ;;  %v554_v63 = vsel %vm529_vm3, %v2463_v51, 16  ;;  %v556_v3 = vsel %vm531_vm4, %v2463_v51, 16  ;;  %v2500_v7 = vcvt.s32.f32 %v610_v62 }
  0xb7   : > { %v2503_v10 = vsel %vm250_vm0, %v554_v63, 2147483647  ;;  %v2506_v11 = vsel %vm250_vm0, %v556_v3, 2147483647 }
  0xb8   : > { %583 = vmin.xlane.f32.xlu1 %v2490_v61  ;;  %v2496_v4 = vpop.xlane.xlu0 %264  ;;  %v2498_v6 = vpop.xlane.xlu1 %267  ;;  %v595_v14 = vshra.s32 %v2503_v10, 16  ;;  %v625_v15 = vshra.s32 %v2506_v11, 16 }
  0xb9   : > { %vm532_vm5 = vcmp.ge.f32.partialorder %v2358_v8, %v2496_v4  ;;  %vm533_vm6 = vcmp.ge.f32.partialorder %v2361_v9, %v2498_v6 }
  0xba   : > { %v557_v18 = vsel %vm532_vm5, %v2463_v51, 16  ;;  %v558_v19 = vsel %vm533_vm6, %v2463_v51, 16  ;;  %v2517_v22 = vcvt.s32.f32 %v595_v14  ;;  %v2534_v31 = vcvt.s32.f32 %v625_v15 }
  0xbb   : > { %v2524_v27 = vsel %vm250_vm0, %v557_v18, 2147483647  ;;  %v2527_v30 = vsel %vm250_vm0, %v558_v19, 2147483647 }
  0xbc   : > { %613 = vmin.xlane.f32.xlu1 %v2500_v7  ;;  %v2519_v23 = vpop.xlane.xlu0 %270  ;;  %v2521_v26 = vpop.xlane.xlu1 %300  ;;  %598 = vmin.xlane.f32.xlu0 %v2517_v22  ;;  %v640_v34 = vshra.s32 %v2524_v27, 16  ;;  %v655_v35 = vshra.s32 %v2527_v30, 16 }
  0xbd   : > { %3531 = vst [vmem:[#allocation22_spill] sm:$0xff] %v2521_v26  ;;  %vm534_vm7 = vcmp.ge.f32.partialorder %v2368_v12, %v2519_v23  ;;  %vm544_vm8 = vcmp.ge.f32.partialorder %v2371_v13, %v2521_v26 }
  0xbe   : > { %v559_v38 = vsel %vm534_vm7, %v2463_v51, 16  ;;  %v569_v39 = vsel %vm544_vm8, %v2463_v51, 16  ;;  %v2540_v42 = vcvt.s32.f32 %v640_v34  ;;  %v2558_v54 = vcvt.s32.f32 %v655_v35 }
  0xbf   : > { %v2547_v47 = vsel %vm250_vm0, %v559_v38, 2147483647  ;;  %v2550_v49 = vsel %vm250_vm0, %v569_v39, 2147483647 }
  0xc0   : > { %v2542_v43 = vpop.xlane.xlu0 %273  ;;  %v2544_v46 = vpop.xlane.xlu1 %303  ;;  %628 = vmin.xlane.f32.xlu0 %v2534_v31  ;;  %643 = vmin.xlane.f32.xlu1 %v2540_v42  ;;  %v670_v55 = vshra.s32 %v2547_v47, 16  ;;  %v820_v59 = vshra.s32 %v2550_v49, 16 }
  0xc1   : > { %3532 = vst [vmem:[#allocation23_spill] sm:$0xff] %v2542_v43  ;;  %3533 = vst [vmem:[#allocation24_spill] sm:$0xff] %v2544_v46  ;;  %vm535_vm9 = vcmp.ge.f32.partialorder %v2378_v16, %v2542_v43  ;;  %vm545_vm10 = vcmp.ge.f32.partialorder %v2381_v17, %v2544_v46 }
  0xc2   : > { %v560_v62 = vsel %vm535_vm9, %v2463_v51, 16  ;;  %v570_v63 = vsel %vm545_vm10, %v2463_v51, 16  ;;  %v2564_v3 = vcvt.s32.f32 %v670_v55  ;;  %v2583_v35 = vcvt.s32.f32 %v820_v59 }
  0xc3   : > { %v2571_v18 = vsel %vm250_vm0, %v560_v62, 2147483647  ;;  %v2574_v19 = vsel %vm250_vm0, %v570_v63, 2147483647 }
  0xc4   : > { %v2566_v14 = vpop.xlane.xlu0 %276  ;;  %v2568_v15 = vpop.xlane.xlu1 %306  ;;  %658 = vmin.xlane.f32.xlu0 %v2558_v54  ;;  %673 = vmin.xlane.f32.xlu1 %v2564_v3  ;;  %v685_v38 = vshra.s32 %v2571_v18, 16  ;;  %v835_v39 = vshra.s32 %v2574_v19, 16 }
  0xc5   : > { %3534 = vst [vmem:[#allocation25_spill] sm:$0xff] %v2566_v14  ;;  %3535 = vst [vmem:[#allocation26_spill] sm:$0xff] %v2568_v15  ;;  %vm536_vm11 = vcmp.ge.f32.partialorder %v2388_v20, %v2566_v14  ;;  %vm546_vm12 = vcmp.ge.f32.partialorder %v2391_v21, %v2568_v15 }
  0xc6   : > { %v561_v34 = vsel %vm536_vm11, %v2463_v51, 16  ;;  %v571_v55 = vsel %vm546_vm12, %v2463_v51, 16  ;;  %v2588_v62 = vcvt.s32.f32 %v685_v38  ;;  %v2607_v38 = vcvt.s32.f32 %v835_v39 }
  0xc7   : > { %v2595_v17 = vsel %vm250_vm0, %v561_v34, 2147483647  ;;  %v2598_v46 = vsel %vm250_vm0, %v571_v55, 2147483647 }
  0xc8   : > { %v2590_v63 = vpop.xlane.xlu0 %279  ;;  %v2592_v50 = vpop.xlane.xlu1 %309  ;;  %823 = vmin.xlane.f32.xlu0 %v2583_v35  ;;  %688 = vmin.xlane.f32.xlu1 %v2588_v62  ;;  %v700_v34 = vshra.s32 %v2595_v17, 16  ;;  %v850_v21 = vshra.s32 %v2598_v46, 16 }
  0xc9   : > { %3536 = vst [vmem:[#allocation27_spill] sm:$0xff] %v2590_v63  ;;  %3537 = vst [vmem:[#allocation28_spill] sm:$0xff] %v2592_v50  ;;  %vm537_vm13 = vcmp.ge.f32.partialorder %v2398_v24, %v2590_v63  ;;  %vm547_vm14 = vcmp.ge.f32.partialorder %v2401_v25, %v2592_v50 }
  0xca   : > { %v562_v59 = vsel %vm537_vm13, %v2463_v51, 16  ;;  %v572_v63 = vsel %vm547_vm14, %v2463_v51, 16  ;;  %v2619_v20 = vcvt.s32.f32 %v700_v34  ;;  %v2628_v25 = vcvt.s32.f32 %v850_v21 }
  0xcb   : > { %v2616_v24 = vsel %vm250_vm0, %v562_v59, 2147483647  ;;  %v2632_v50 = vsel %vm250_vm0, %v572_v63, 2147483647 }
  0xcc   : > { %v2611_v55 = vpop.xlane.xlu0 %282  ;;  %v2613_v15 = vpop.xlane.xlu1 %312  ;;  %838 = vmin.xlane.f32.xlu0 %v2607_v38  ;;  %703 = vmin.xlane.f32.xlu1 %v2619_v20  ;;  %v715_v59 = vshra.s32 %v2616_v24, 16 }
  0xcd   : > { %3538 = vst [vmem:[#allocation29_spill] sm:$0xff] %v2611_v55  ;;  %3539 = vst [vmem:[#allocation30_spill] sm:$0xff] %v2613_v15  ;;  %vm538_vm15 = vcmp.ge.f32.partialorder %v2408_v28, %v2611_v55  ;;  %vm548_vm1 = vcmp.ge.f32.partialorder %v2411_v29, %v2613_v15  ;;  %v865_v28 = vshra.s32 %v2632_v50, 16 }
  0xce   : > { %v563_v39 = vsel %vm538_vm15, %v2463_v51, 16  ;;  %v573_v29 = vsel %vm548_vm1, %v2463_v51, 16  ;;  %v2643_v15 = vcvt.s32.f32 %v715_v59 }
  0xcf   : > { %v2640_v55 = vsel %vm250_vm0, %v563_v39, 2147483647  ;;  %v2652_v63 = vcvt.s32.f32 %v865_v28  ;;  %v2656_v13 = vsel %vm250_vm0, %v573_v29, 2147483647 }
  0xd0   : > { %v2634_v34 = vpop.xlane.xlu0 %285  ;;  %v2636_v14 = vpop.xlane.xlu1 %315  ;;  %853 = vmin.xlane.f32.xlu0 %v2628_v25  ;;  %718 = vmin.xlane.f32.xlu1 %v2643_v15  ;;  %v730_v39 = vshra.s32 %v2640_v55, 16 }
  0xd1   : > { %3540 = vst [vmem:[#allocation31_spill] sm:$0xff] %v2634_v34  ;;  %3541 = vst [vmem:[#allocation32_spill] sm:$0xff] %v2636_v14  ;;  %vm539_vm2 = vcmp.ge.f32.partialorder %v2418_v32, %v2634_v34  ;;  %vm549_vm3 = vcmp.ge.f32.partialorder %v2421_v33, %v2636_v14  ;;  %v880_v32 = vshra.s32 %v2656_v13, 16 }
  0xd2   : > { %v564_v21 = vsel %vm539_vm2, %v2463_v51, 16  ;;  %v574_v33 = vsel %vm549_vm3, %v2463_v51, 16  ;;  %v2667_v14 = vcvt.s32.f32 %v730_v39  ;;  %v327_v39 = vsub.f32 %v2344_v2, %v2478_v57 }
  0xd3   : > { %v2664_v34 = vsel %vm250_vm0, %v564_v21, 2147483647  ;;  %v2676_v29 = vcvt.s32.f32 %v880_v32  ;;  %v2680_v16 = vsel %vm250_vm0, %v574_v33, 2147483647  ;;  %v328_v2 = vsub.f32 %v2341_v1, %v2467_v53 }
  0xd4   : > { %v2658_v59 = vpop.xlane.xlu0 %288  ;;  %v2660_v26 = vpop.xlane.xlu1 %318  ;;  %868 = vmin.xlane.f32.xlu0 %v2652_v63  ;;  %733 = vmin.xlane.f32.xlu1 %v2667_v14  ;;  %v745_v21 = vshra.s32 %v2664_v34, 16  ;;  %v895_v43 = vshra.s32 %v2680_v16, 16  ;;  %v329_v57 = vsub.f32 %v2351_v5, %v2480_v58  ;;  %v353_v1 = vmul.f32 1.442695, %v327_v39 }
  0xd5   : > { %3542 = vst [vmem:[#allocation33_spill] sm:$0xff] %v2658_v59  ;;  %3543 = vst [vmem:[#allocation34_spill] sm:$0xff] %v2660_v26  ;;  %vm540_vm4 = vcmp.ge.f32.partialorder %v2428_v36, %v2658_v59  ;;  %vm550_vm5 = vcmp.ge.f32.partialorder %v2431_v37, %v2660_v26  ;;  %v326_v26 = vsub.f32 %v2338_v0, %v2465_v52 }
  0xd6   : > { %v565_v28 = vsel %vm540_vm4, %v2463_v51, 16  ;;  %v575_v32 = vsel %vm550_vm5, %v2463_v51, 16  ;;  %v2695_v12 = vcvt.s32.f32 %v745_v21  ;;  %v2708_v0 = vcvt.s32.f32 %v895_v43 }
  0xd7   : > { %v2690_v37 = vsel %vm250_vm0, %v565_v28, 2147483647  ;;  %v2712_v28 = vsel %vm250_vm0, %v575_v32, 2147483647  ;;  %v351_v58 = vmul.f32 1.442695, %v326_v26  ;;  %2066 = vpow2.f32 %v353_v1 }
  0xd8   : > { %v2684_v36 = vpop.xlane.xlu0 %291  ;;  %v2686_v59 = vpop.xlane.xlu1 %321  ;;  %883 = vmin.xlane.f32.xlu0 %v2676_v29  ;;  %748 = vmin.xlane.f32.xlu1 %v2695_v12  ;;  %v760_v52 = vshra.s32 %v2690_v37, 16  ;;  %v355_v32 = vmul.f32 1.442695, %v328_v2 }
  0xd9   : > { %3544 = vst [vmem:[#allocation35_spill] sm:$0xff] %v2684_v36  ;;  %3545 = vst [vmem:[#allocation36_spill] sm:$0xff] %v2686_v59  ;;  %vm541_vm6 = vcmp.ge.f32.partialorder %v2438_v40, %v2684_v36  ;;  %vm551_vm7 = vcmp.ge.f32.partialorder %v2441_v41, %v2686_v59  ;;  %v910_v40 = vshra.s32 %v2712_v28, 16  ;;  %v357_v59 = vmul.f32 1.442695, %v329_v57 }
  0xda   : > { %v566_v33 = vsel %vm541_vm6, %v2463_v51, 16  ;;  %v576_v5 = vsel %vm551_vm7, %v2463_v51, 16  ;;  %v2723_v43 = vcvt.s32.f32 %v760_v52  ;;  %2068 = vpow2.f32 %v351_v58 }
  0xdb   : > { %v2720_v41 = vsel %vm250_vm0, %v566_v33, 2147483647  ;;  %v2732_v33 = vcvt.s32.f32 %v910_v40  ;;  %v2736_v52 = vsel %vm250_vm0, %v576_v5, 2147483647  ;;  %v330_v40 = vsub.f32 %v2358_v8, %v2496_v4 }
  0xdc   : > { %v2714_v53 = vpop.xlane.xlu0 %294  ;;  %v2716_v21 = vpop.xlane.xlu1 %324  ;;  %898 = vmin.xlane.f32.xlu0 %v2708_v0  ;;  %763 = vmin.xlane.f32.xlu1 %v2723_v43  ;;  %v775_v26 = vshra.s32 %v2720_v41, 16  ;;  %v925_v2 = vshra.s32 %v2736_v52, 16  ;;  %2070 = vpow2.f32 %v357_v59  ;;  %v2249_v36 = vmov 0.0|0.0  }
  0xdd   : > { %3546 = vst [vmem:[#allocation37_spill] sm:$0xff] %v2714_v53  ;;  %3547 = vst [vmem:[#allocation38_spill] sm:$0xff] %v2716_v21  ;;  %vm542_vm8 = vcmp.ge.f32.partialorder %v2448_v44, %v2714_v53  ;;  %vm552_vm9 = vcmp.ge.f32.partialorder %v2451_v45, %v2716_v21  ;;  %2072 = vpow2.f32 %v355_v32  ;;  %1858 = vmatprep.subr.bf16.mxu0 %v2249_v36 }
  0xde   : > { %v567_v39 = vsel %vm542_vm8, %v2463_v51, 16  ;;  %v577_v45 = vsel %vm552_vm9, %v2463_v51, 16  ;;  %v2747_v57 = vcvt.s32.f32 %v775_v26  ;;  %v2753_v5 = vcvt.s32.f32 %v925_v2 }
  0xdf   : > { %v2742_v53 = vsel %vm250_vm0, %v567_v39, 2147483647  ;;  %v2758_v58 = vsel %vm250_vm0, %v577_v45, 2147483647  ;;  %v359_v2 = vmul.f32 1.442695, %v330_v40 }
  0xe0   : > { %v2738_v44 = vpop.xlane.xlu0 %297  ;;  %913 = vmin.xlane.f32.xlu0 %v2732_v33  ;;  %v790_v39 = vshra.s32 %v2742_v53, 16  ;;  %778 = vmin.xlane.f32.xlu1 %v2747_v57 }
  0xe1   : > { %3548 = vst [vmem:[#allocation39_spill] sm:$0xff] %v2738_v44  ;;  %vm543_vm10 = vcmp.ge.f32.partialorder %v2458_v48, %v2738_v44  ;;  %v940_v48 = vshra.s32 %v2758_v58, 16  ;;  %2074 = vpow2.f32 %v359_v2 }
  0xe2   : > { %v568_v1 = vsel %vm543_vm10, %v2463_v51, 16  ;;  %v2763_v4 = vcvt.s32.f32 %v790_v39 }
  0xe3   : > { %v2761_v8 = vsel %vm250_vm0, %v568_v1, 2147483647  ;;  %v2768_v44 = vcvt.s32.f32 %v940_v48  ;;  %v2067_v1 = vpop.eup %2066 }
  0xe4   : > { %v805_v26 = vshra.s32 %v2761_v8, 16  ;;  %928 = vmin.xlane.f32.xlu0 %v2753_v5  ;;  %793 = vmin.xlane.f32.xlu1 %v2763_v4  ;;  %v2069_v59 = vpop.eup %2068  ;;  %v404_v39 = vsel %vm250_vm0, %v2067_v1, 0.0  ;;  %v579_v1 = vand.u32 65535, %v2476_v56 }
  0xe5   : > { %v401_v32 = vsel %vm250_vm0, %v2069_v59, 0.0 }
  0xe6   : > { %v2771_v45 = vcvt.s32.f32 %v805_v26  ;;  %v2071_v21 = vpop.eup %2070  ;;  %v581_v59 = vcvt.s32.f32 %v579_v1  ;;  %v639_v1 = vand.u32 65535, %v2524_v27 }
  0xe7   : > { %v2073_v40 = vpop.eup %2072  ;;  %v410_v48 = vsel %vm250_vm0, %v2071_v21, 0.0 }
  0xe8   : > { %943 = vmin.xlane.f32.xlu0 %v2768_v44  ;;  %808 = vmin.xlane.f32.xlu1 %v2771_v45  ;;  %v407_v26 = vsel %vm250_vm0, %v2073_v40, 0.0  ;;  %v594_v40 = vand.u32 65535, %v2503_v10 }
  0xeb   : > { %v2075_v2 = vpop.eup %2074 }
  0xec   : > { %405 = vadd.xlane.f32.xlu0 %v404_v39  ;;  %402 = vadd.xlane.f32.xlu1 %v401_v32  ;;  %v413_v51 = vsel %vm250_vm0, %v2075_v2, 0.0  ;;  %v609_v32 = vand.u32 65535, %v2484_v60  ;;  %v596_v2 = vcvt.s32.f32 %v594_v40  ;;  %v624_v60 = vand.u32 65535, %v2506_v11 }
  0xed   : > { %v654_v40 = vand.u32 65535, %v2527_v30  ;;  %v819_v30 = vand.u32 65535, %v2550_v49  ;;  %v699_v49 = vand.u32 65535, %v2595_v17 }
  0xf0   : > { %411 = vadd.xlane.f32.xlu0 %v410_v48  ;;  %408 = vadd.xlane.f32.xlu1 %v407_v26 }
  0xf4   : > { %414 = vadd.xlane.f32.xlu1 %v413_v51  ;;  %v611_v51 = vcvt.s32.f32 %v609_v32  ;;  %v641_v32 = vcvt.s32.f32 %v639_v1 }
 0x145   : > { %v2782_v39 = vpop.xlane.xlu1 %583 }
 0x146   : > { %vm585_vm11 = vcmp.eq.f32.partialorder %v2490_v61, %v2782_v39 }
 0x147   : > { %v586_v21 = vsel %vm585_vm11, %v581_v59, inf }
 0x148   : > { %587 = vmin.xlane.f32.xlu0 %v586_v21  ;;  %v669_v21 = vand.u32 65535, %v2547_v47  ;;  %v684_v47 = vand.u32 65535, %v2571_v18  ;;  %v834_v18 = vand.u32 65535, %v2574_v19  ;;  %v701_v19 = vcvt.s32.f32 %v699_v49 }
 0x149   : > { %v2788_v48 = vpop.xlane.xlu1 %613  ;;  %v2792_v26 = vpop.xlane.xlu0 %598 }
 0x14a   : > { %vm615_vm12 = vcmp.eq.f32.partialorder %v2500_v7, %v2788_v48  ;;  %vm600_vm13 = vcmp.eq.f32.partialorder %v2517_v22, %v2792_v26  ;;  %v626_v7 = vcvt.s32.f32 %v624_v60 }
 0x14b   : > { %v616_v56 = vsel %vm615_vm12, %v611_v51, inf  ;;  %v601_v61 = vsel %vm600_vm13, %v596_v2, inf  ;;  %v656_v2 = vcvt.s32.f32 %v654_v40  ;;  %v849_v40 = vand.u32 65535, %v2598_v46 }
 0x14c   : > { %617 = vmin.xlane.f32.xlu0 %v616_v56  ;;  %602 = vmin.xlane.f32.xlu1 %v601_v61  ;;  %v671_v56 = vcvt.s32.f32 %v669_v21  ;;  %v686_v61 = vcvt.s32.f32 %v684_v47  ;;  %v836_v21 = vcvt.s32.f32 %v834_v18  ;;  %v864_v46 = vand.u32 65535, %v2632_v50  ;;  %v3549_v18 = vld [vmem:[#allocation5_spill] sm:$0xff] }
 0x14d   : > { %v2798_v10 = vpop.xlane.xlu1 %643  ;;  %v2800_v59 = vpop.xlane.xlu0 %628  ;;  %v879_v50 = vand.u32 65535, %v2656_v13  ;;  %v332_v13 = vsub.f32 %v3549_v18, %v2519_v23  ;;  %v3556_v18 = vld [vmem:[#allocation24_spill] sm:$0xff] }
 0x14e   : > { %vm645_vm14 = vcmp.eq.f32.partialorder %v2540_v42, %v2798_v10  ;;  %vm630_vm15 = vcmp.eq.f32.partialorder %v2534_v31, %v2800_v59 }
 0x14f   : > { %v646_v11 = vsel %vm645_vm14, %v641_v32, inf  ;;  %v631_v22 = vsel %vm630_vm15, %v626_v7, inf  ;;  %v821_v32 = vcvt.s32.f32 %v819_v30 }
 0x150   : > { %647 = vmin.xlane.f32.xlu0 %v646_v11  ;;  %632 = vmin.xlane.f32.xlu1 %v631_v22 }
 0x151   : > { %v2808_v27 = vpop.xlane.xlu1 %673  ;;  %v2810_v51 = vpop.xlane.xlu0 %658 }
 0x152   : > { %vm675_vm1 = vcmp.eq.f32.partialorder %v2564_v3, %v2808_v27  ;;  %vm660_vm2 = vcmp.eq.f32.partialorder %v2558_v54, %v2810_v51 }
 0x153   : > { %v676_v31 = vsel %vm675_vm1, %v671_v56, inf  ;;  %v661_v42 = vsel %vm660_vm2, %v656_v2, inf  ;;  %v851_v56 = vcvt.s32.f32 %v849_v40  ;;  %v363_v40 = vmul.f32 1.442695, %v332_v13  ;;  %v3557_v13 = vld [vmem:[#allocation8_spill] sm:$0xff] }
 0x154   : > { %677 = vmin.xlane.f32.xlu0 %v676_v31  ;;  %662 = vmin.xlane.f32.xlu1 %v661_v42  ;;  %v866_v31 = vcvt.s32.f32 %v864_v46  ;;  %v3552_v46 = vld [vmem:[#allocation22_spill] sm:$0xff] }
 0x155   : > { %v2818_v1 = vpop.xlane.xlu1 %688  ;;  %v2820_v60 = vpop.xlane.xlu0 %823 }
 0x156   : > { %vm690_vm3 = vcmp.eq.f32.partialorder %v2588_v62, %v2818_v1  ;;  %vm825_vm4 = vcmp.eq.f32.partialorder %v2583_v35, %v2820_v60  ;;  %v714_v62 = vand.u32 65535, %v2616_v24  ;;  %v729_v24 = vand.u32 65535, %v2640_v55 }
 0x157   : > { %v691_v54 = vsel %vm690_vm3, %v686_v61, inf  ;;  %v826_v3 = vsel %vm825_vm4, %v821_v32, inf  ;;  %v331_v55 = vsub.f32 %v2361_v9, %v2498_v6  ;;  %v759_v9 = vand.u32 65535, %v2690_v37 }
 0x158   : > { %692 = vmin.xlane.f32.xlu0 %v691_v54  ;;  %827 = vmin.xlane.f32.xlu1 %v826_v3  ;;  %v716_v47 = vcvt.s32.f32 %v714_v62  ;;  %v731_v61 = vcvt.s32.f32 %v729_v24  ;;  %v881_v54 = vcvt.s32.f32 %v879_v50  ;;  %v2250_v3 = vmov 0  }
 0x159   : > { %v2828_v7 = vpop.xlane.xlu0 %838  ;;  %v2831_v11 = vpop.xlane.xlu1 %703  ;;  %2010 = vset.pattern.permute.xlu1 %v2250_v3  ;;  %2004 = vset.pattern.permute.xlu0 %v2250_v3  ;;  %v361_v23 = vmul.f32 1.442695, %v331_v55  ;;  %v761_v37 = vcvt.s32.f32 %v759_v9  ;;  %v3559_v3 = vld [vmem:[#allocation10_spill] sm:$0xff] }
 0x15a   : > { %vm840_vm5 = vcmp.eq.f32.partialorder %v2607_v38, %v2828_v7  ;;  %vm705_vm6 = vcmp.eq.f32.partialorder %v2619_v20, %v2831_v11 }
 0x15b   : > { %v841_v17 = vsel %vm840_vm5, %v836_v21, inf  ;;  %v706_v35 = vsel %vm705_vm6, %v701_v19, inf  ;;  %v3551_v19 = vld [vmem:[#allocation7_spill] sm:$0xff]  ;;  %2076 = vpow2.f32 %v361_v23 }
 0x15c   : > { %842 = vmin.xlane.f32.xlu1 %v841_v17  ;;  %707 = vmin.xlane.f32.xlu0 %v706_v35  ;;  %2078 = vpow2.f32 %v363_v40  ;;  %v3561_v23 = vld [vmem:[#allocation11_spill] sm:$0xff]  ;;  %v939_v40 = vand.u32 65535, %v2758_v58 }
 0x15d   : > { %v2838_v22 = vpop.xlane.xlu0 %853  ;;  %v2841_v2 = vpop.xlane.xlu1 %718 }
 0x15e   : > { %vm855_vm7 = vcmp.eq.f32.partialorder %v2628_v25, %v2838_v22  ;;  %vm720_vm8 = vcmp.eq.f32.partialorder %v2643_v15, %v2841_v2  ;;  %v744_v25 = vand.u32 65535, %v2664_v34 }
 0x15f   : > { %v856_v20 = vsel %vm855_vm7, %v851_v56, inf  ;;  %v721_v38 = vsel %vm720_vm8, %v716_v47, inf  ;;  %v3553_v47 = vld [vmem:[#allocation6_spill] sm:$0xff] }
 0x160   : > { %857 = vmin.xlane.f32.xlu1 %v856_v20  ;;  %722 = vmin.xlane.f32.xlu0 %v721_v38  ;;  %v342_v24 = vsub.f32 %v3553_v47, %v3552_v46  ;;  %v3563_v46 = vld [vmem:[#allocation12_spill] sm:$0xff] }
 0x161   : > { %v2848_v30 = vpop.xlane.xlu0 %868  ;;  %v2851_v42 = vpop.xlane.xlu1 %733 }
 0x162   : > { %vm870_vm9 = vcmp.eq.f32.partialorder %v2652_v63, %v2848_v30  ;;  %vm735_vm10 = vcmp.eq.f32.partialorder %v2667_v14, %v2851_v42  ;;  %v894_v63 = vand.u32 65535, %v2680_v16  ;;  %v746_v14 = vcvt.s32.f32 %v744_v25  ;;  %v3550_v16 = vld [vmem:[#allocation23_spill] sm:$0xff] }
 0x163   : > { %v871_v15 = vsel %vm870_vm9, %v866_v31, inf  ;;  %v736_v32 = vsel %vm735_vm10, %v731_v61, inf  ;;  %v333_v62 = vsub.f32 %v3551_v19, %v3550_v16  ;;  %v3554_v61 = vld [vmem:[#allocation25_spill] sm:$0xff] }
 0x164   : > { %872 = vmin.xlane.f32.xlu1 %v871_v15  ;;  %737 = vmin.xlane.f32.xlu0 %v736_v32  ;;  %v896_v35 = vcvt.s32.f32 %v894_v63  ;;  %v383_v32 = vmul.f32 1.442695, %v342_v24 }
 0x165   : > { %v2862_v49 = vpop.xlane.xlu0 %883  ;;  %v2865_v34 = vpop.xlane.xlu1 %748 }
 0x166   : > { %vm885_vm11 = vcmp.eq.f32.partialorder %v2676_v29, %v2862_v49  ;;  %vm750_vm12 = vcmp.eq.f32.partialorder %v2695_v12, %v2865_v34  ;;  %v909_v29 = vand.u32 65535, %v2712_v28  ;;  %v774_v12 = vand.u32 65535, %v2720_v41  ;;  %v3555_v41 = vld [vmem:[#allocation9_spill] sm:$0xff] }
 0x167   : > { %v886_v6 = vsel %vm885_vm11, %v881_v54, inf  ;;  %v751_v21 = vsel %vm750_vm12, %v746_v14, inf  ;;  %v365_v28 = vmul.f32 1.442695, %v333_v62  ;;  %v334_v25 = vsub.f32 %v3555_v41, %v3554_v61 }
 0x168   : > { %887 = vmin.xlane.f32.xlu1 %v886_v6  ;;  %752 = vmin.xlane.f32.xlu0 %v751_v21  ;;  %v911_v50 = vcvt.s32.f32 %v909_v29  ;;  %v776_v55 = vcvt.s32.f32 %v774_v12  ;;  %v343_v54 = vsub.f32 %v3557_v13, %v3556_v18  ;;  %v3560_v6 = vld [vmem:[#allocation27_spill] sm:$0xff]  ;;  %v804_v62 = vand.u32 65535, %v2761_v8  ;;  %v3562_v12 = vld [vmem:[#allocation28_spill] sm:$0xff] }
 0x169   : > { %v2874_v17 = vpop.xlane.xlu0 %898  ;;  %v2877_v56 = vpop.xlane.xlu1 %763  ;;  %2080 = vpow2.f32 %v365_v28  ;;  %v335_v21 = vsub.f32 %v3561_v23, %v3560_v6  ;;  %v367_v16 = vmul.f32 1.442695, %v334_v25  ;;  %v345_v47 = vsub.f32 %v3563_v46, %v3562_v12 }
 0x16a   : > { %vm900_vm13 = vcmp.eq.f32.partialorder %v2708_v0, %v2874_v17  ;;  %vm765_vm14 = vcmp.eq.f32.partialorder %v2723_v43, %v2877_v56  ;;  %v924_v0 = vand.u32 65535, %v2736_v52  ;;  %v789_v43 = vand.u32 65535, %v2742_v53  ;;  %v3558_v52 = vld [vmem:[#allocation26_spill] sm:$0xff] }
 0x16b   : > { %v901_v20 = vsel %vm900_vm13, %v896_v35, inf  ;;  %v766_v38 = vsel %vm765_vm14, %v761_v37, inf  ;;  %v344_v14 = vsub.f32 %v3559_v3, %v3558_v52  ;;  %2082 = vpow2.f32 %v383_v32 }
 0x16c   : > { %902 = vmin.xlane.f32.xlu1 %v901_v20  ;;  %767 = vmin.xlane.f32.xlu0 %v766_v38  ;;  %v926_v53 = vcvt.s32.f32 %v924_v0  ;;  %v385_v35 = vmul.f32 1.442695, %v343_v54  ;;  %v369_v24 = vmul.f32 1.442695, %v335_v21  ;;  %v3564_v20 = vld [vmem:[#allocation33_spill] sm:$0xff]  ;;  %v941_v8 = vcvt.s32.f32 %v939_v40  ;;  %v3569_v21 = vld [vmem:[#allocation30_spill] sm:$0xff] }
 0x16d   : > { %v2886_v31 = vpop.xlane.xlu0 %913  ;;  %v2891_v15 = vpop.xlane.xlu1 %778  ;;  %v387_v37 = vmul.f32 1.442695, %v344_v14  ;;  %v3565_v38 = vld [vmem:[#allocation17_spill] sm:$0xff]  ;;  %2084 = vpow2.f32 %v367_v16  ;;  %v3566_v61 = vlaneseq }
 0x16e   : > { %vm915_vm15 = vcmp.eq.f32.partialorder %v2732_v33, %v2886_v31  ;;  %vm780_vm1 = vcmp.eq.f32.partialorder %v2747_v57, %v2891_v15  ;;  %v791_v57 = vcvt.s32.f32 %v789_v43  ;;  %v338_v28 = vsub.f32 %v3565_v38, %v3564_v20  ;;  %v3567_v54 = vld [vmem:[#allocation29_spill] sm:$0xff]  ;;  %v3571_v20 = vld [vmem:[#allocation31_spill] sm:$0xff] }
 0x16f   : > { %v916_v63 = vsel %vm915_vm15, %v911_v50, inf  ;;  %v781_v9 = vsel %vm780_vm1, %v776_v55, inf  ;;  %v2077_v50 = vpop.eup %2076  ;;  %v2925_v41 = vshrl.u32 %v3566_v61, 7  ;;  %2086 = vpow2.f32 %v385_v35  ;;  %v3572_v38 = vld [vmem:[#allocation15_spill] sm:$0xff] }
 0x170   : > { %917 = vmin.xlane.f32.xlu1 %v916_v63  ;;  %782 = vmin.xlane.f32.xlu0 %v781_v9  ;;  %v2079_v25 = vpop.eup %2078  ;;  %2088 = vpow2.f32 %v387_v37  ;;  %v389_v43 = vmul.f32 1.442695, %v345_v47  ;;  %v375_v18 = vmul.f32 1.442695, %v338_v28  ;;  %v2934_v9 = vstv %s1080_s29 }
 0x171   : > { %v2904_v33 = vpop.xlane.xlu0 %928  ;;  %v2907_v19 = vpop.xlane.xlu1 %793  ;;  %2090 = vpow2.f32 %v369_v24  ;;  %v1056_v3 = vadd.s32 8, %v2925_v41  ;;  %v416_v6 = vsel %vm250_vm0, %v2077_v50, 0.0  ;;  %v1082_v12 = vadd.s32 %v2934_v9, %v2925_v41 }
 0x172   : > { %vm930_vm2 = vcmp.eq.f32.partialorder %v2753_v5, %v2904_v33  ;;  %vm795_vm3 = vcmp.eq.f32.partialorder %v2763_v4, %v2907_v19  ;;  %v806_v4 = vcvt.s32.f32 %v804_v62  ;;  %v1057_v46 = vadd.s32 16, %v2925_v41 }
 0x173   : > { %v931_v29 = vsel %vm930_vm2, %v926_v53, inf  ;;  %v796_v58 = vsel %vm795_vm3, %v791_v57, inf  ;;  %v2081_v14 = vpop.eup %2080  ;;  %v3570_v53 = vld [vmem:[#allocation14_spill] sm:$0xff]  ;;  %v1083_v35 = vadd.s32 %v2934_v9, %v1056_v3  ;;  %v337_v28 = vsub.f32 %v3572_v38, %v3571_v20 }
 0x174   : > { %932 = vmin.xlane.f32.xlu1 %v931_v29  ;;  %797 = vmin.xlane.f32.xlu0 %v796_v58  ;;  %v346_v40 = vsub.f32 %v3570_v53, %v3569_v21  ;;  %v1058_v29 = vadd.s32 24, %v2925_v41  ;;  %v422_v37 = vsel %vm250_vm0, %v2081_v14, 0.0  ;;  %vm1107_vm7 = vcmp.lt.s32.totalorder %v1082_v12, 200  ;;  %v3576_v12 = vld [vmem:[#allocation18_spill] sm:$0xff] }
 0x175   : > { %v2918_v5 = vpop.xlane.xlu0 %943  ;;  %v2920_v0 = vpop.xlane.xlu1 %808  ;;  %vm1108_vm6 = vcmp.lt.s32.totalorder %v1083_v35, 200 }
 0x176   : > { %vm945_vm4 = vcmp.eq.f32.partialorder %v2768_v44, %v2918_v5  ;;  %vm810_vm5 = vcmp.eq.f32.partialorder %v2771_v45, %v2920_v0  ;;  %v3568_v44 = vld [vmem:[#allocation13_spill] sm:$0xff]  ;;  %v419_v45 = vsel %vm250_vm0, %v2079_v25, 0.0  ;;  %v2083_v23 = vpop.eup %2082  ;;  %v391_v50 = vmul.f32 1.442695, %v346_v40 }
 0x177   : > { %v946_v55 = vsel %vm945_vm4, %v941_v8, inf  ;;  %v811_v32 = vsel %vm810_vm5, %v806_v4, inf  ;;  %v336_v63 = vsub.f32 %v3568_v44, %v3567_v54  ;;  %v2085_v47 = vpop.eup %2084  ;;  %v449_v58 = vsel %vm250_vm0, %v2083_v23, 0.0  ;;  %v3573_v54 = vld [vmem:[#allocation32_spill] sm:$0xff] }
 0x178   : > { %947 = vmin.xlane.f32.xlu1 %v946_v55  ;;  %812 = vmin.xlane.f32.xlu0 %v811_v32  ;;  %v1085_v4 = vadd.s32 %v2934_v9, %v1058_v29  ;;  %v425_v25 = vsel %vm250_vm0, %v2085_v47, 0.0  ;;  %v1084_v55 = vadd.s32 %v2934_v9, %v1057_v46  ;;  %v3574_v44 = vld [vmem:[#allocation16_spill] sm:$0xff] }
 0x179   : > { %v406_v13 = vpop.xlane.xlu0 %405  ;;  %v403_v52 = vpop.xlane.xlu1 %402  ;;  %v371_v57 = vmul.f32 1.442695, %v336_v63  ;;  %v347_v63 = vsub.f32 %v3574_v44, %v3573_v54 }
 0x17a   : > { %2092 = vrcp.f32 %v406_v13  ;;  %v2087_v24 = vpop.eup %2086  ;;  %v373_v13 = vmul.f32 1.442695, %v337_v28  ;;  %vm1110_vm8 = vcmp.lt.s32.totalorder %v1085_v4, 200  ;;  %vm1109_vm9 = vcmp.lt.s32.totalorder %v1084_v55, 200 }
 0x17b   : > { %2094 = vrcp.f32 %v403_v52  ;;  %v2089_v8 = vpop.eup %2088  ;;  %v452_v32 = vsel %vm250_vm0, %v2087_v24, 0.0 }
 0x17c   : > { %2096 = vpow2.f32 %v389_v43  ;;  %420 = vadd.xlane.f32.xlu1 %v419_v45  ;;  %417 = vadd.xlane.f32.xlu0 %v416_v6  ;;  %v2091_v61 = vpop.eup %2090  ;;  %v455_v40 = vsel %vm250_vm0, %v2089_v8, 0.0 }
 0x17d   : > { %2098 = vpow2.f32 %v375_v18  ;;  %v412_v16 = vpop.xlane.xlu0 %411  ;;  %v409_v62 = vpop.xlane.xlu1 %408  ;;  %v428_v23 = vsel %vm250_vm0, %v2091_v61, 0.0 }
 0x17e   : > { %2100 = vrcp.f32 %v412_v16 }
 0x17f   : > { %2102 = vrcp.f32 %v409_v62  ;;  %v393_v62 = vmul.f32 1.442695, %v347_v63 }
 0x180   : > { %423 = vadd.xlane.f32.xlu1 %v422_v37  ;;  %450 = vadd.xlane.f32.xlu0 %v449_v58  ;;  %2104 = vpow2.f32 %v371_v57  ;;  %v3575_v37 = vld [vmem:[#allocation34_spill] sm:$0xff] }
 0x181   : > { %2106 = vpow2.f32 %v391_v50  ;;  %v348_v46 = vsub.f32 %v3576_v12, %v3575_v37  ;;  %v2251_v12 = vmov 1.0|1.0  }
 0x182   : > { %2108 = vpow2.f32 %v373_v13 }
 0x183   : > { %2110 = vpow2.f32 %v393_v62 }
 0x184   : > { %v2093_v43 = vpop.eup %2092  ;;  %426 = vadd.xlane.f32.xlu1 %v425_v25  ;;  %453 = vadd.xlane.f32.xlu0 %v452_v32  ;;  %v3577_v32 = vld [vmem:[#allocation35_spill] sm:$0xff] }
 0x185   : > { %v2095_v18 = vpop.eup %2094  ;;  %v2954_v52 = vsel %vm1108_vm6, %v2093_v43, 0.0  ;;  %v395_v43 = vmul.f32 1.442695, %v348_v46 }
 0x186   : > { %v2097_v3 = vpop.eup %2096  ;;  %v2956_v14 = vsel %vm1107_vm7, %v2095_v18, 0.0  ;;  %v1158_v45 = vmul.f32 10.0, %v2954_v52  ;;  %v3578_v18 = vld [vmem:[#allocation19_spill] sm:$0xff] }
 0x187   : > { %v2099_v6 = vpop.eup %2098  ;;  %v1157_v21 = vmul.f32 10.0, %v2956_v14  ;;  %v458_v20 = vsel %vm250_vm0, %v2097_v3, 0.0  ;;  %v339_v13 = vsub.f32 %v3578_v18, %v3577_v32  ;;  %2112 = vpow2.f32 %v395_v43 }
 0x188   : > { %v2101_v53 = vpop.eup %2100  ;;  %429 = vadd.xlane.f32.xlu1 %v428_v23  ;;  %v1183_v16 = vceil.f32 %v1158_v45  ;;  %456 = vadd.xlane.f32.xlu0 %v455_v40  ;;  %v437_v50 = vsel %vm250_vm0, %v2099_v6, 0.0  ;;  %v3579_v6 = vld [vmem:[#allocation21_spill] sm:$0xff] }
 0x189   : > { %v2103_v57 = vpop.eup %2102  ;;  %v1182_v35 = vceil.f32 %v1157_v21  ;;  %v2962_v29 = vsel %vm1110_vm8, %v2101_v53, 0.0  ;;  %v377_v40 = vmul.f32 1.442695, %v339_v13  ;;  %v2168_v13 = vld [vmem:[%s2335_s28 + $0x78] sm:$0xff] }
 0x18a   : > { %v1779_v47 = vadd.f32 -1.0, %v1183_v16  ;;  %v2966_v58 = vsel %vm1109_vm9, %v2103_v57, 0.0  ;;  %v1160_v24 = vmul.f32 10.0, %v2962_v29  ;;  %v2105_v8 = vpop.eup %2104  ;;  %v3580_v16 = vld [vmem:[#allocation36_spill] sm:$0xff] }
 0x18b   : > { %v1778_v38 = vadd.f32 -1.0, %v1182_v35  ;;  %v1159_v28 = vmul.f32 10.0, %v2966_v58  ;;  %v431_v63 = vsel %vm250_vm0, %v2105_v8, 0.0  ;;  %v2107_v23 = vpop.eup %2106  ;;  %v3581_v57 = vld [vmem:[#allocation20_spill] sm:$0xff]  ;;  %2114 = vpow2.f32 %v377_v40 }
 0x18c   : > { %459 = vadd.xlane.f32.xlu1 %v458_v20  ;;  %v1896_v4 = vtrunc.f32 %v1779_v47  ;;  %v1185_v61 = vceil.f32 %v1160_v24  ;;  %438 = vadd.xlane.f32.xlu0 %v437_v50  ;;  %v349_v62 = vsub.f32 %v3581_v57, %v3580_v16  ;;  %v2109_v37 = vpop.eup %2108  ;;  %v461_v46 = vsel %vm250_vm0, %v2107_v23, 0.0  ;;  %v2166_v20 = vld [vmem:[%s2335_s28 + $0x70] sm:$0xff] }
 0x18d   : > { %v1894_v25 = vtrunc.f32 %v1778_v38  ;;  %v1184_v55 = vceil.f32 %v1159_v28  ;;  %v3582_v38 = vld [vmem:[#allocation37_spill] sm:$0xff]  ;;  %v2111_v8 = vpop.eup %2110  ;;  %v434_v50 = vsel %vm250_vm0, %v2109_v37, 0.0 }
 0x18e   : > { %v1897_v54 = vcvt.f32.s32 %v1896_v4  ;;  %v1781_v44 = vadd.f32 -1.0, %v1185_v61  ;;  %v397_v24 = vmul.f32 1.442695, %v349_v62  ;;  %v340_v28 = vsub.f32 %v2166_v20, %v3582_v38  ;;  %v2167_v61 = vld [vmem:[%s2335_s28 + $0xc0] sm:$0xff] }
 0x18f   : > { %v1895_v3 = vcvt.f32.s32 %v1894_v25  ;;  %v1780_v45 = vadd.f32 -1.0, %v1184_v55  ;;  %v3583_v25 = vld [vmem:[#allocation38_spill] sm:$0xff]  ;;  %v464_v43 = vsel %vm250_vm0, %v2111_v8, 0.0  ;;  %v620_v20 = vcvt.f32.s32 %v2788_v48  ;;  %v953_v8 = vld [vmem:[%s3006_s4] sm:$0xff] }
 0x190   : > { %432 = vadd.xlane.f32.xlu1 %v431_v63  ;;  %vm1258_vm10 = vcmp.eq.s32.totalorder %v1897_v54, %v3579_v6  ;;  %v1900_v21 = vtrunc.f32 %v1781_v44  ;;  %2116 = vpow2.f32 %v397_v24  ;;  %v379_v4 = vmul.f32 1.442695, %v340_v28  ;;  %v3584_v54 = vld [vmem:[#allocation39_spill] sm:$0xff]  ;;  %v3009_v28 = vpop.xlane.xlu1 %414 }
 0x191   : > { %vm1257_vm11 = vcmp.eq.s32.totalorder %v1895_v3, %v3579_v6  ;;  %v1898_v53 = vtrunc.f32 %v1780_v45  ;;  %v350_v55 = vsub.f32 %v2167_v61, %v3583_v25  ;;  %v2113_v32 = vpop.eup %2112  ;;  %v341_v44 = vsub.f32 %v2168_v13, %v3584_v54 }
 0x192   : > { %vm1859_vm12 = vmpackc.low %vm1258_vm10, %vm1257_vm11  ;;  %v1901_v35 = vcvt.f32.s32 %v1900_v21  ;;  %2118 = vpow2.f32 %v379_v4  ;;  %v467_v63 = vsel %vm250_vm0, %v2113_v32, 0.0  ;;  %v621_v61 = vshll.u32 %v620_v20, 16  ;;  %v955_v32 = vld [vmem:[%s3006_s4 + $0x10] sm:$0xff] }
 0x193   : > { %1860 = vmatpush1.bf16.msk.msra.mxu0 %vm1859_vm12, %v2251_v12  ;;  %v1899_v47 = vcvt.f32.s32 %v1898_v53  ;;  %v399_v18 = vmul.f32 1.442695, %v350_v55  ;;  %v381_v45 = vmul.f32 1.442695, %v341_v44  ;;  %v650_v55 = vcvt.f32.s32 %v2798_v10  ;;  %v954_v44 = vld [vmem:[%s3006_s4 + $0x8] sm:$0xff] }
 0x194   : > { %462 = vadd.xlane.f32.xlu1 %v461_v46  ;;  %1861 = vmatprep.subr.bf16.mxu0 %v2249_v36  ;;  %vm1260_vm13 = vcmp.eq.s32.totalorder %v1901_v35, %v3579_v6  ;;  %v590_v46 = vcvt.f32.s32 %v2782_v39  ;;  %v635_v48 = vcvt.f32.s32 %v2800_v59  ;;  %v2252_v59 = vmov 0.0  }
 0x195   : > { %vm1259_vm14 = vcmp.eq.s32.totalorder %v1899_v47, %v3579_v6  ;;  %v2115_v3 = vpop.eup %2114  ;;  %2120 = vpow2.f32 %v399_v18  ;;  %v830_v20 = vcvt.f32.s32 %v2820_v60 }
 0x196   : > { %vm1862_vm15 = vmpackc.low %vm1260_vm13, %vm1259_vm14  ;;  %v440_v23 = vsel %vm250_vm0, %v2115_v3, 0.0  ;;  %2122 = vpow2.f32 %v381_v45  ;;  %v591_v24 = vshll.u32 %v590_v46, 16  ;;  %v680_v3 = vcvt.f32.s32 %v2808_v27 }
 0x197   : > { %1863 = vmatpush1.bf16.msk.msra.mxu0 %vm1862_vm15, %v2251_v12  ;;  %v665_v45 = vcvt.f32.s32 %v2810_v51  ;;  %v636_v10 = vshll.u32 %v635_v48, 16  ;;  %v831_v48 = vshll.u32 %v830_v20, 16  ;;  %2124 = vrcp.f32 %v3009_v28 }
 0x198   : > { %435 = vadd.xlane.f32.xlu1 %v434_v50  ;;  %1864 = vmatprep.subr.bf16.mxu0 %v2249_v36  ;;  %v605_v50 = vcvt.f32.s32 %v2792_v26  ;;  %v651_v26 = vshll.u32 %v650_v55, 16  ;;  %v681_v51 = vshll.u32 %v680_v3, 16  ;;  %v959_v55 = vld [vmem:[%s3006_s4 + $0x30] sm:$0xff]  ;;  %v969_v3 = vld [vmem:[%s3006_s4 + $0x80] sm:$0xff] }
 0x19a   : > { %v2117_v21 = vpop.eup %2116  ;;  %v606_v18 = vshll.u32 %v605_v50, 16 }
 0x19b   : > { %v470_v53 = vsel %vm250_vm0, %v2117_v21, 0.0 }
 0x19c   : > { %465 = vadd.xlane.f32.xlu1 %v464_v43  ;;  %v2119_v40 = vpop.eup %2118 }
 0x19d   : > { %v443_v16 = vsel %vm250_vm0, %v2119_v40, 0.0 }
 0x19f   : > { %v2121_v57 = vpop.eup %2120 }
 0x1a0   : > { %468 = vadd.xlane.f32.xlu1 %v467_v63  ;;  %v473_v62 = vsel %vm250_vm0, %v2121_v57, 0.0  ;;  %v2123_v35 = vpop.eup %2122  ;;  %v957_v57 = vld [vmem:[%s3006_s4 + $0x20] sm:$0xff] }
 0x1a1   : > { %v446_v37 = vsel %vm250_vm0, %v2123_v35, 0.0 }
 0x1a4   : > { %441 = vadd.xlane.f32.xlu1 %v440_v23 }
 0x1a8   : > { %471 = vadd.xlane.f32.xlu1 %v470_v53 }
 0x1ac   : > { %444 = vadd.xlane.f32.xlu1 %v443_v16  ;;  %v956_v16 = vld [vmem:[%s3006_s4 + $0x18] sm:$0xff] }
 0x1b0   : > { %474 = vadd.xlane.f32.xlu1 %v473_v62 }
 0x1b4   : > { %447 = vadd.xlane.f32.xlu1 %v446_v37 }
 0x1d5   : > { %v588_v47 = vpop.xlane.xlu0 %587 }
 0x1d6   : > { %v589_v38 = vcvt.f32.s32 %v588_v47  ;;  %v666_v47 = vshll.u32 %v665_v45, 16  ;;  %v960_v45 = vld [vmem:[%s3006_s4 + $0x38] sm:$0xff] }
 0x1d8   : > { %v592_v39 = vadd.s32 %v591_v24, %v589_v38  ;;  %v695_v24 = vcvt.f32.s32 %v2818_v1 }
 0x1d9   : > { %v618_v4 = vpop.xlane.xlu0 %617  ;;  %v603_v43 = vpop.xlane.xlu1 %602 }
 0x1da   : > { %vm978_vm0 = vcmp.eq.s32.totalorder %v592_v39, %v953_v8  ;;  %v619_v25 = vcvt.f32.s32 %v618_v4  ;;  %v604_v13 = vcvt.f32.s32 %v603_v43  ;;  %v696_v60 = vshll.u32 %v695_v24, 16 }
 0x1db   : > { %v1753_v62 = vsel %vm978_vm0, 1.0, %v2252_v59 }
 0x1dc   : > { %v622_v54 = vadd.s32 %v621_v61, %v619_v25  ;;  %v607_v63 = vadd.s32 %v606_v18, %v604_v13  ;;  %v958_v25 = vld [vmem:[%s3006_s4 + $0x28] sm:$0xff]  ;;  %v845_v13 = vcvt.f32.s32 %v2828_v7 }
 0x1dd   : > { %v633_v23 = vpop.xlane.xlu1 %632  ;;  %v648_v21 = vpop.xlane.xlu0 %647 }
 0x1de   : > { %vm980_vm1 = vcmp.eq.s32.totalorder %v622_v54, %v955_v32  ;;  %vm979_vm2 = vcmp.eq.s32.totalorder %v607_v63, %v954_v44  ;;  %v634_v53 = vcvt.f32.s32 %v633_v23  ;;  %v649_v40 = vcvt.f32.s32 %v648_v21 }
 0x1df   : > { %v1754_v35 = vsel %vm979_vm2, 1.0, %v2252_v59  ;;  %v1755_v39 = vsel %vm980_vm1, 1.0, %v2252_v59  ;;  %v710_v54 = vcvt.f32.s32 %v2831_v11 }
 0x1e0   : > { %v637_v37 = vadd.s32 %v636_v10, %v634_v53  ;;  %v652_v46 = vadd.s32 %v651_v26, %v649_v40  ;;  %v2005_v27 = vpack.i.bf16 %v1754_v35, %v1753_v62  ;;  %v846_v40 = vshll.u32 %v845_v13, 16 }
 0x1e1   : > { %v663_v38 = vpop.xlane.xlu1 %662  ;;  %v678_v50 = vpop.xlane.xlu0 %677  ;;  %v725_v35 = vcvt.f32.s32 %v2841_v2  ;;  %v875_v2 = vcvt.f32.s32 %v2848_v30 }
 0x1e2   : > { %vm981_vm3 = vcmp.eq.s32.totalorder %v637_v37, %v956_v16  ;;  %vm982_vm4 = vcmp.eq.s32.totalorder %v652_v46, %v957_v57  ;;  %v664_v4 = vcvt.f32.s32 %v663_v38  ;;  %v679_v8 = vcvt.f32.s32 %v678_v50  ;;  %2006 = vperm.xlu0 %2004, %v2005_v27  }
 0x1e3   : > { %v1756_v61 = vsel %vm981_vm3, 1.0, %v2252_v59  ;;  %v1757_v23 = vsel %vm982_vm4, 1.0, %v2252_v59  ;;  %v860_v16 = vcvt.f32.s32 %v2838_v22  ;;  %v711_v57 = vshll.u32 %v710_v54, 16  ;;  %v961_v22 = vld [vmem:[%s3006_s4 + $0x40] sm:$0xff] }
 0x1e4   : > { %v2011_v43 = vpack.i.bf16 %v1756_v61, %v1755_v39  ;;  %v667_v1 = vadd.s32 %v666_v47, %v664_v4  ;;  %v682_v18 = vadd.s32 %v681_v51, %v679_v8  ;;  %v970_v51 = vld [vmem:[%s3006_s4 + $0x88] sm:$0xff]  ;;  %v740_v38 = vcvt.f32.s32 %v2851_v42 }
 0x1e5   : > { %v828_v44 = vpop.xlane.xlu1 %827  ;;  %v693_v63 = vpop.xlane.xlu0 %692  ;;  %v726_v8 = vshll.u32 %v725_v35, 16  ;;  %v861_v39 = vshll.u32 %v860_v16, 16  ;;  %v876_v13 = vshll.u32 %v875_v2, 16 }
 0x1e6   : > { %vm983_vm5 = vcmp.eq.s32.totalorder %v667_v1, %v958_v25  ;;  %vm984_vm6 = vcmp.eq.s32.totalorder %v682_v18, %v959_v55  ;;  %v829_v26 = vcvt.f32.s32 %v828_v44  ;;  %v694_v32 = vcvt.f32.s32 %v693_v63  ;;  %2012 = vperm.xlu1 %2010, %v2011_v43   ;;  %v971_v55 = vld [vmem:[%s3006_s4 + $0x90] sm:$0xff] }
 0x1e7   : > { %v1758_v21 = vsel %vm983_vm5, 1.0, %v2252_v59  ;;  %v1759_v46 = vsel %vm984_vm6, 1.0, %v2252_v59 }
 0x1e8   : > { %v832_v10 = vadd.s32 %v831_v48, %v829_v26  ;;  %v697_v53 = vadd.s32 %v696_v60, %v694_v32  ;;  %v2016_v7 = vpack.i.bf16 %v1758_v21, %v1757_v23  ;;  %v962_v60 = vld [vmem:[%s3006_s4 + $0x48] sm:$0xff]  ;;  %v741_v48 = vshll.u32 %v740_v38, 16 }
 0x1e9   : > { %v843_v62 = vpop.xlane.xlu1 %842  ;;  %v708_v37 = vpop.xlane.xlu0 %707  ;;  %v755_v26 = vcvt.f32.s32 %v2865_v34  ;;  %v890_v32 = vcvt.f32.s32 %v2862_v49  ;;  %v770_v34 = vcvt.f32.s32 %v2877_v56  ;;  %v905_v49 = vcvt.f32.s32 %v2874_v17 }
 0x1ea   : > { %vm994_vm7 = vcmp.eq.s32.totalorder %v832_v10, %v969_v3  ;;  %vm985_vm8 = vcmp.eq.s32.totalorder %v697_v53, %v960_v45  ;;  %v844_v11 = vcvt.f32.s32 %v843_v62  ;;  %2017 = vperm.xlu0 %2004, %v2016_v7   ;;  %v709_v47 = vcvt.f32.s32 %v708_v37  ;;  %v972_v45 = vld [vmem:[%s3006_s4 + $0x98] sm:$0xff]  ;;  %v963_v7 = vld [vmem:[%s3006_s4 + $0x50] sm:$0xff] }
 0x1eb   : > { %v1769_v27 = vsel %vm994_vm7, 1.0, %v2252_v59  ;;  %v1760_v1 = vsel %vm985_vm8, 1.0, %v2252_v59  ;;  %v756_v35 = vshll.u32 %v755_v26, 16 }
 0x1ec   : > { %v2021_v24 = vpack.i.bf16 %v1769_v27, %v1759_v46  ;;  %v847_v20 = vadd.s32 %v846_v40, %v844_v11  ;;  %v712_v50 = vadd.s32 %v711_v57, %v709_v47  ;;  %v891_v11 = vshll.u32 %v890_v32, 16 }
 0x1ed   : > { %v858_v4 = vpop.xlane.xlu1 %857  ;;  %v723_v25 = vpop.xlane.xlu0 %722 }
 0x1ee   : > { %vm995_vm9 = vcmp.eq.s32.totalorder %v847_v20, %v970_v51  ;;  %v859_v61 = vcvt.f32.s32 %v858_v4  ;;  %2022 = vperm.xlu1 %2010, %v2021_v24   ;;  %vm986_vm10 = vcmp.eq.s32.totalorder %v712_v50, %v961_v22  ;;  %v724_v43 = vcvt.f32.s32 %v723_v25  ;;  %v973_v51 = vld [vmem:[%s3006_s4 + $0xa0] sm:$0xff]  ;;  %v964_v24 = vld [vmem:[%s3006_s4 + $0x58] sm:$0xff] }
 0x1ef   : > { %v1770_v42 = vsel %vm995_vm9, 1.0, %v2252_v59  ;;  %v1761_v21 = vsel %vm986_vm10, 1.0, %v2252_v59  ;;  %v771_v20 = vshll.u32 %v770_v34, 16  ;;  %v906_v22 = vshll.u32 %v905_v49, 16 }
 0x1f0   : > { %v862_v18 = vadd.s32 %v861_v39, %v859_v61  ;;  %v2026_v30 = vpack.i.bf16 %v1770_v42, %v1760_v1  ;;  %v727_v44 = vadd.s32 %v726_v8, %v724_v43  ;;  %v785_v50 = vcvt.f32.s32 %v2891_v15  ;;  %v965_v15 = vld [vmem:[%s3006_s4 + $0x60] sm:$0xff] }
 0x1f1   : > { %v873_v63 = vpop.xlane.xlu1 %872  ;;  %v738_v3 = vpop.xlane.xlu0 %737  ;;  %v920_v4 = vcvt.f32.s32 %v2886_v31  ;;  %v800_v31 = vcvt.f32.s32 %v2907_v19  ;;  %v975_v19 = vld [vmem:[%s3006_s4 + $0xb0] sm:$0xff]  ;;  %v950_v34 = vcvt.f32.s32 %v2918_v5 }
 0x1f2   : > { %vm996_vm11 = vcmp.eq.s32.totalorder %v862_v18, %v971_v55  ;;  %v874_v54 = vcvt.f32.s32 %v873_v63  ;;  %2027 = vperm.xlu0 %2004, %v2026_v30   ;;  %vm987_vm12 = vcmp.eq.s32.totalorder %v727_v44, %v962_v60  ;;  %v739_v23 = vcvt.f32.s32 %v738_v3  ;;  %v974_v55 = vld [vmem:[%s3006_s4 + $0xa8] sm:$0xff]  ;;  %v2125_v5 = vpop.eup %2124 }
 0x1f3   : > { %v1771_v10 = vsel %vm996_vm11, 1.0, %v2252_v59  ;;  %v1762_v46 = vsel %vm987_vm12, 1.0, %v2252_v59  ;;  %v935_v18 = vcvt.f32.s32 %v2904_v33  ;;  %v921_v44 = vshll.u32 %v920_v4, 16 }
 0x1f4   : > { %v877_v53 = vadd.s32 %v876_v13, %v874_v54  ;;  %v2031_v40 = vpack.i.bf16 %v1771_v10, %v1761_v21  ;;  %v742_v16 = vadd.s32 %v741_v48, %v739_v23  ;;  %v1059_v48 = vadd.s32 32, %v2925_v41 }
 0x1f5   : > { %v888_v62 = vpop.xlane.xlu1 %887  ;;  %v753_v57 = vpop.xlane.xlu0 %752  ;;  %v786_v13 = vshll.u32 %v785_v50, 16  ;;  %v801_v23 = vshll.u32 %v800_v31, 16  ;;  %v936_v21 = vshll.u32 %v935_v18, 16 }
 0x1f6   : > { %vm997_vm13 = vcmp.eq.s32.totalorder %v877_v53, %v972_v45  ;;  %v889_v37 = vcvt.f32.s32 %v888_v62  ;;  %2032 = vperm.xlu0 %2004, %v2031_v40   ;;  %vm988_vm14 = vcmp.eq.s32.totalorder %v742_v16, %v963_v7  ;;  %v754_v47 = vcvt.f32.s32 %v753_v57  ;;  %v966_v45 = vld [vmem:[%s3006_s4 + $0x68] sm:$0xff] }
 0x1f7   : > { %v1772_v27 = vsel %vm997_vm13, 1.0, %v2252_v59  ;;  %v1763_v61 = vsel %vm988_vm14, 1.0, %v2252_v59  ;;  %v1086_v7 = vadd.s32 %v2934_v9, %v1059_v48  ;;  %v815_v40 = vcvt.f32.s32 %v2920_v0 }
 0x1f8   : > { %v2036_v56 = vpack.i.bf16 %v1772_v27, %v1762_v46  ;;  %v892_v17 = vadd.s32 %v891_v11, %v889_v37  ;;  %v757_v38 = vadd.s32 %v756_v35, %v754_v47  ;;  %v976_v11 = vld [vmem:[%s3006_s4 + $0xb8] sm:$0xff]  ;;  %v967_v27 = vld [vmem:[%s3006_s4 + $0x70] sm:$0xff]  ;;  %v1062_v48 = vadd.s32 56, %v2925_v41 }
 0x1f9   : > { %v903_v2 = vpop.xlane.xlu1 %902  ;;  %v768_v39 = vpop.xlane.xlu0 %767  ;;  %vm1111_vm5 = vcmp.lt.s32.totalorder %v1086_v7, 200  ;;  %v816_v47 = vshll.u32 %v815_v40, 16 }
 0x1fa   : > { %vm998_vm15 = vcmp.eq.s32.totalorder %v892_v17, %v973_v51  ;;  %v904_v8 = vcvt.f32.s32 %v903_v2  ;;  %2037 = vperm.xlu0 %2004, %v2036_v56   ;;  %vm989_vm0 = vcmp.eq.s32.totalorder %v757_v38, %v964_v24  ;;  %v769_v43 = vcvt.f32.s32 %v768_v39  ;;  %v977_v38 = vld [vmem:[%s3006_s4 + $0xc0] sm:$0xff] }
 0x1fb   : > { %v1773_v25 = vsel %vm998_vm15, 1.0, %v2252_v59  ;;  %v1764_v28 = vsel %vm989_vm0, 1.0, %v2252_v59  ;;  %v951_v56 = vshll.u32 %v950_v34, 16 }
 0x1fc   : > { %v2041_v1 = vpack.i.bf16 %v1773_v25, %v1763_v61  ;;  %v907_v42 = vadd.s32 %v906_v22, %v904_v8  ;;  %v772_v60 = vadd.s32 %v771_v20, %v769_v43  ;;  %v968_v8 = vld [vmem:[%s3006_s4 + $0x78] sm:$0xff]  ;;  %v3096_v25 = vsel %vm1111_vm5, %v2125_v5, 0.0 }
 0x1fd   : > { %v918_v30 = vpop.xlane.xlu1 %917  ;;  %v783_v26 = vpop.xlane.xlu0 %782  ;;  %v1060_v43 = vadd.s32 40, %v2925_v41 }
 0x1fe   : > { %vm999_vm1 = vcmp.eq.s32.totalorder %v907_v42, %v974_v55  ;;  %v919_v63 = vcvt.f32.s32 %v918_v30  ;;  %2042 = vperm.xlu0 %2004, %v2041_v1   ;;  %vm990_vm2 = vcmp.eq.s32.totalorder %v772_v60, %v965_v15  ;;  %v784_v54 = vcvt.f32.s32 %v783_v26 }
 0x1ff   : > { %v1774_v32 = vsel %vm999_vm1, 1.0, %v2252_v59  ;;  %v1765_v62 = vsel %vm990_vm2, 1.0, %v2252_v59  ;;  %v1061_v1 = vadd.s32 48, %v2925_v41  ;;  %v1161_v30 = vmul.f32 10.0, %v3096_v25 }
 0x200   : > { %v2046_v33 = vpack.i.bf16 %v1774_v32, %v1764_v28  ;;  %v922_v3 = vadd.s32 %v921_v44, %v919_v63  ;;  %v787_v10 = vadd.s32 %v786_v13, %v784_v54  ;;  %v1087_v63 = vadd.s32 %v2934_v9, %v1060_v43 }
 0x201   : > { %v933_v53 = vpop.xlane.xlu1 %932  ;;  %v798_v16 = vpop.xlane.xlu0 %797  ;;  %v1088_v44 = vadd.s32 %v2934_v9, %v1061_v1  ;;  %v1186_v28 = vceil.f32 %v1161_v30  ;;  %v1089_v32 = vadd.s32 %v2934_v9, %v1062_v48 }
 0x202   : > { %vm1000_vm3 = vcmp.eq.s32.totalorder %v922_v3, %v975_v19  ;;  %v934_v49 = vcvt.f32.s32 %v933_v53  ;;  %2047 = vperm.xlu1 %2010, %v2046_v33   ;;  %vm991_vm4 = vcmp.eq.s32.totalorder %v787_v10, %v966_v45  ;;  %v799_v37 = vcvt.f32.s32 %v798_v16 }
 0x203   : > { %v1775_v35 = vsel %vm1000_vm3, 1.0, %v2252_v59  ;;  %v1766_v20 = vsel %vm991_vm4, 1.0, %v2252_v59  ;;  %vm1113_vm10 = vcmp.lt.s32.totalorder %v1088_v44, 200  ;;  %v1063_v19 = vadd.s32 64, %v2925_v41 }
 0x204   : > { %v2051_v57 = vpack.i.bf16 %v1775_v35, %v1765_v62  ;;  %v937_v46 = vadd.s32 %v936_v21, %v934_v49  ;;  %v802_v51 = vadd.s32 %v801_v23, %v799_v37  ;;  %vm1112_vm11 = vcmp.lt.s32.totalorder %v1087_v63, 200 }
 0x205   : > { %v948_v0 = vpop.xlane.xlu1 %947  ;;  %v813_v24 = vpop.xlane.xlu0 %812  ;;  %v1782_v23 = vadd.f32 -1.0, %v1186_v28  ;;  %vm1114_vm12 = vcmp.lt.s32.totalorder %v1089_v32, 200  ;;  %v1064_v10 = vadd.s32 72, %v2925_v41  ;;  %v1090_v40 = vadd.s32 %v2934_v9, %v1063_v19 }
 0x206   : > { %vm1001_vm6 = vcmp.eq.s32.totalorder %v937_v46, %v976_v11  ;;  %v949_v17 = vcvt.f32.s32 %v948_v0  ;;  %2052 = vperm.xlu0 %2004, %v2051_v57   ;;  %vm992_vm7 = vcmp.eq.s32.totalorder %v802_v51, %v967_v27  ;;  %v814_v2 = vcvt.f32.s32 %v813_v24 }
 0x207   : > { %v1776_v22 = vsel %vm1001_vm6, 1.0, %v2252_v59  ;;  %v1767_v42 = vsel %vm992_vm7, 1.0, %v2252_v59  ;;  %v1902_v11 = vtrunc.f32 %v1782_v23  ;;  %v1091_v57 = vadd.s32 %v2934_v9, %v1064_v10 }
 0x208   : > { %v2056_v50 = vpack.i.bf16 %v1776_v22, %v1766_v20  ;;  %v952_v4 = vadd.s32 %v951_v56, %v949_v17  ;;  %v817_v39 = vadd.s32 %v816_v47, %v814_v2  ;;  %vm1115_vm13 = vcmp.lt.s32.totalorder %v1090_v40, 200 }
 0x209   : > { %v421_v61 = vpop.xlane.xlu1 %420  ;;  %v418_v55 = vpop.xlane.xlu0 %417  ;;  %v1903_v24 = vcvt.f32.s32 %v1902_v11  ;;  %vm1116_vm14 = vcmp.lt.s32.totalorder %v1091_v57, 200  ;;  %v1066_v63 = vadd.s32 88, %v2925_v41  ;;  %v1067_v28 = vadd.s32 96, %v2925_v41 }
 0x20a   : > { %vm1002_vm8 = vcmp.eq.s32.totalorder %v952_v4, %v977_v38  ;;  %2126 = vrcp.f32 %v421_v61  ;;  %2057 = vperm.xlu1 %2010, %v2056_v50   ;;  %vm993_vm9 = vcmp.eq.s32.totalorder %v817_v39, %v968_v8  ;;  %v1065_v50 = vadd.s32 80, %v2925_v41 }
 0x20b   : > { %v1777_v15 = vsel %vm1002_vm8, 1.0, %v2252_v59  ;;  %2128 = vrcp.f32 %v418_v55  ;;  %v1768_v60 = vsel %vm993_vm9, 1.0, %v2252_v59  ;;  %vm1261_vm15 = vcmp.eq.s32.totalorder %v1903_v24, %v3579_v6 }
 0x20c   : > { %v2061_v31 = vpack.i.bf16 %v1777_v15, %v1767_v42  ;;  %v1093_v10 = vadd.s32 %v2934_v9, %v1066_v63  ;;  %v1094_v40 = vadd.s32 %v2934_v9, %v1067_v28  ;;  %v1076_v28 = vadd.s32 168, %v2925_v41 }
 0x20d   : > { %v424_v18 = vpop.xlane.xlu1 %423  ;;  %v3105_v13 = vpop.xlane.xlu0 %450 }
 0x20e   : > { %2130 = vrcp.f32 %v424_v18  ;;  %2062 = vperm.xlu0 %2004, %v2061_v31   ;;  %1412 = vperm.xlu1 %2010, %v1768_v60   ;;  %v1092_v60 = vadd.s32 %v2934_v9, %v1065_v50  ;;  %vm1118_vm9 = vcmp.lt.s32.totalorder %v1093_v10, 200  ;;  %v1075_v10 = vadd.s32 160, %v2925_v41 }
 0x210   : > { %vm1117_vm5 = vcmp.lt.s32.totalorder %v1092_v60, 200 }
 0x211   : > { %v427_v26 = vpop.xlane.xlu1 %426  ;;  %v3111_v33 = vpop.xlane.xlu0 %453 }
 0x212   : > { %2132 = vrcp.f32 %v427_v26 }
 0x214   : > { %v2127_v54 = vpop.eup %2126 }
 0x215   : > { %v2129_v3 = vpop.eup %2128  ;;  %v430_v45 = vpop.xlane.xlu1 %429  ;;  %v3113_v21 = vsel %vm1113_vm10, %v2127_v54, 0.0  ;;  %vm1119_vm10 = vcmp.lt.s32.totalorder %v1094_v40, 200 }
 0x216   : > { %2134 = vrcp.f32 %v430_v45  ;;  %v3116_v53 = vsel %vm1112_vm11, %v2129_v3, 0.0  ;;  %v1163_v7 = vmul.f32 10.0, %v3113_v21  ;;  %v3126_v46 = vpop.xlane.xlu0 %456 }
 0x217   : > { %v1162_v34 = vmul.f32 10.0, %v3116_v53 }
 0x218   : > { %v2131_v49 = vpop.eup %2130  ;;  %v1188_v16 = vceil.f32 %v1163_v7 }
 0x219   : > { %v3121_v62 = vpop.xlane.xlu1 %459  ;;  %v1187_v35 = vceil.f32 %v1162_v34  ;;  %v3123_v37 = vsel %vm1114_vm12, %v2131_v49, 0.0 }
 0x21a   : > { %v1164_v27 = vmul.f32 10.0, %v3123_v37  ;;  %v1784_v51 = vadd.f32 -1.0, %v1188_v16  ;;  %v439_v39 = vpop.xlane.xlu0 %438 }
 0x21b   : > { %v1783_v0 = vadd.f32 -1.0, %v1187_v35 }
 0x21c   : > { %v2133_v5 = vpop.eup %2132  ;;  %v1189_v47 = vceil.f32 %v1164_v27  ;;  %v1906_v56 = vtrunc.f32 %v1784_v51 }
 0x21d   : > { %v433_v17 = vpop.xlane.xlu1 %432  ;;  %v1904_v20 = vtrunc.f32 %v1783_v0  ;;  %v3129_v22 = vsel %vm1115_vm13, %v2133_v5, 0.0  ;;  %v1068_v5 = vadd.s32 104, %v2925_v41 }
 0x21e   : > { %2136 = vrcp.f32 %v433_v17  ;;  %v1785_v38 = vadd.f32 -1.0, %v1189_v47  ;;  %v1165_v2 = vmul.f32 10.0, %v3129_v22  ;;  %v1907_v61 = vcvt.f32.s32 %v1906_v56 }
 0x21f   : > { %v1905_v4 = vcvt.f32.s32 %v1904_v20  ;;  %2138 = vrcp.f32 %v439_v39 }
 0x220   : > { %v2135_v8 = vpop.eup %2134  ;;  %v1908_v55 = vtrunc.f32 %v1785_v38  ;;  %v1190_v43 = vceil.f32 %v1165_v2  ;;  %vm1263_vm2 = vcmp.eq.s32.totalorder %v1907_v61, %v3579_v6  ;;  %v1095_v38 = vadd.s32 %v2934_v9, %v1068_v5 }
 0x221   : > { %v3133_v1 = vpop.xlane.xlu1 %462  ;;  %vm1262_vm0 = vcmp.eq.s32.totalorder %v1905_v4, %v3579_v6  ;;  %v3137_v42 = vsel %vm1116_vm14, %v2135_v8, 0.0  ;;  %v1072_v2 = vadd.s32 136, %v2925_v41  ;;  %v1071_v61 = vadd.s32 128, %v2925_v41 }
 0x222   : > { %vm1865_vm1 = vmpackc.low %vm1262_vm0, %vm1261_vm15  ;;  %v1909_v15 = vcvt.f32.s32 %v1908_v55  ;;  %v1166_v31 = vmul.f32 10.0, %v3137_v42  ;;  %v1786_v18 = vadd.f32 -1.0, %v1190_v43  ;;  %vm1120_vm11 = vcmp.lt.s32.totalorder %v1095_v38, 200 }
 0x223   : > { %1866 = vmatpush1.bf16.msk.msra.mxu0 %vm1865_vm1, %v2251_v12  ;;  %v1099_v43 = vadd.s32 %v2934_v9, %v1072_v2 }
 0x224   : > { %1867 = vmatprep.subr.bf16.mxu0 %v2249_v36  ;;  %vm1264_vm3 = vcmp.eq.s32.totalorder %v1909_v15, %v3579_v6  ;;  %v1191_v30 = vceil.f32 %v1166_v31  ;;  %v1910_v48 = vtrunc.f32 %v1786_v18  ;;  %v1074_v15 = vadd.s32 152, %v2925_v41 }
 0x225   : > { %v436_v44 = vpop.xlane.xlu1 %435  ;;  %vm1868_vm4 = vmpackc.low %vm1264_vm3, %vm1263_vm2  ;;  %vm1124_vm15 = vcmp.lt.s32.totalorder %v1099_v43, 200 }
 0x226   : > { %2140 = vrcp.f32 %v436_v44  ;;  %v1787_v26 = vadd.f32 -1.0, %v1191_v30  ;;  %v1911_v19 = vcvt.f32.s32 %v1910_v48  ;;  %v1098_v30 = vadd.s32 %v2934_v9, %v1071_v61 }
 0x227   : > { %1869 = vmatpush1.bf16.msk.msra.mxu0 %vm1868_vm4, %v2251_v12 }
 0x228   : > { %v2137_v32 = vpop.eup %2136  ;;  %1870 = vmatprep.subr.bf16.mxu0 %v2249_v36  ;;  %v1912_v54 = vtrunc.f32 %v1787_v26  ;;  %vm1265_vm6 = vcmp.eq.s32.totalorder %v1911_v19, %v3579_v6  ;;  %v1101_v26 = vadd.s32 %v2934_v9, %v1074_v15  ;;  %vm1123_vm0 = vcmp.lt.s32.totalorder %v1098_v30, 200 }
 0x229   : > { %v466_v3 = vpop.xlane.xlu1 %465  ;;  %v3149_v45 = vsel %vm1117_vm5, %v2137_v32, 0.0  ;;  %v2139_v49 = vpop.eup %2138 }
 0x22a   : > { %v1913_v23 = vcvt.f32.s32 %v1912_v54  ;;  %v1167_v7 = vmul.f32 10.0, %v3149_v45  ;;  %v3162_v51 = vsel %vm1119_vm10, %v2139_v49, 0.0  ;;  %vm1126_vm3 = vcmp.lt.s32.totalorder %v1101_v26, 200 }
 0x22b   : > { %v1169_v17 = vmul.f32 10.0, %v3162_v51  ;;  %v1078_v49 = vadd.s32 184, %v2925_v41 }
 0x22c   : > { %vm1266_vm7 = vcmp.eq.s32.totalorder %v1913_v23, %v3579_v6  ;;  %v1192_v34 = vceil.f32 %v1167_v7  ;;  %v1070_v23 = vadd.s32 120, %v2925_v41 }
 0x22d   : > { %v3156_v16 = vpop.xlane.xlu1 %468  ;;  %vm1871_vm8 = vmpackc.low %vm1266_vm7, %vm1265_vm6  ;;  %v1194_v8 = vceil.f32 %v1169_v17 }
 0x22e   : > { %1872 = vmatpush1.bf16.msk.msra.mxu0 %vm1871_vm8, %v2251_v12  ;;  %v1788_v11 = vadd.f32 -1.0, %v1192_v34 }
 0x22f   : > { %1873 = vmatprep.subr.bf16.mxu0 %v2249_v36 }
 0x230   : > { %v2141_v35 = vpop.eup %2140  ;;  %v1914_v56 = vtrunc.f32 %v1788_v11 }
 0x231   : > { %v442_v57 = vpop.xlane.xlu1 %441  ;;  %v3160_v27 = vsel %vm1118_vm9, %v2141_v35, 0.0 }
 0x232   : > { %2142 = vrcp.f32 %v442_v57  ;;  %v1168_v0 = vmul.f32 10.0, %v3160_v27  ;;  %v1915_v50 = vcvt.f32.s32 %v1914_v56 }
 0x233   : > { %2144 = vrcp.f32 %v3111_v33  ;;  %v1069_v33 = vadd.s32 112, %v2925_v41 }
 0x234   : > { %v1193_v47 = vceil.f32 %v1168_v0  ;;  %2146 = vrcp.f32 %v3105_v13  ;;  %v1073_v13 = vadd.s32 144, %v2925_v41  ;;  %vm1267_vm12 = vcmp.eq.s32.totalorder %v1915_v50, %v3579_v6 }
 0x235   : > { %v472_v24 = vpop.xlane.xlu1 %471  ;;  %2148 = vrcp.f32 %v3121_v62  ;;  %v1790_v62 = vadd.f32 -1.0, %v1194_v8  ;;  %v1096_v48 = vadd.s32 %v2934_v9, %v1069_v33 }
 0x236   : > { %v1789_v20 = vadd.f32 -1.0, %v1193_v47  ;;  %v1100_v63 = vadd.s32 %v2934_v9, %v1073_v13  ;;  %v1097_v47 = vadd.s32 %v2934_v9, %v1070_v23 }
 0x237   : > { %v1918_v19 = vtrunc.f32 %v1790_v62  ;;  %vm1121_vm1 = vcmp.lt.s32.totalorder %v1096_v48, 200 }
 0x238   : > { %v1916_v4 = vtrunc.f32 %v1789_v20  ;;  %vm1125_vm2 = vcmp.lt.s32.totalorder %v1100_v63, 200  ;;  %vm1122_vm8 = vcmp.lt.s32.totalorder %v1097_v47, 200 }
 0x239   : > { %v445_v39 = vpop.xlane.xlu1 %444  ;;  %v1919_v11 = vcvt.f32.s32 %v1918_v19 }
 0x23a   : > { %2150 = vrcp.f32 %v445_v39  ;;  %v1917_v55 = vcvt.f32.s32 %v1916_v4  ;;  %v1105_v4 = vadd.s32 %v2934_v9, %v1078_v49 }
 0x23b   : > { %2152 = vrcp.f32 %v3126_v46  ;;  %vm1269_vm5 = vcmp.eq.s32.totalorder %v1919_v11, %v3579_v6 }
 0x23c   : > { %v2143_v31 = vpop.eup %2142  ;;  %vm1268_vm13 = vcmp.eq.s32.totalorder %v1917_v55, %v3579_v6  ;;  %2154 = vrcp.f32 %v466_v3  ;;  %vm1130_vm10 = vcmp.lt.s32.totalorder %v1105_v4, 200 }
 0x23d   : > { %v475_v18 = vpop.xlane.xlu1 %474  ;;  %vm1874_vm14 = vmpackc.low %vm1268_vm13, %vm1267_vm12  ;;  %v3180_v60 = vsel %vm1120_vm11, %v2143_v31, 0.0  ;;  %v2145_v44 = vpop.eup %2144  ;;  %2156 = vrcp.f32 %v3133_v1  ;;  %v1103_v1 = vadd.s32 %v2934_v9, %v1076_v28 }
 0x23e   : > { %1875 = vmatpush1.bf16.msk.msra.mxu0 %vm1874_vm14, %v2251_v12  ;;  %v1170_v46 = vmul.f32 10.0, %v3180_v60  ;;  %v2147_v54 = vpop.eup %2146  ;;  %2158 = vrcp.f32 %v472_v24  ;;  %v3194_v40 = vsel %vm1124_vm15, %v2145_v44, 0.0  ;;  %v1102_v24 = vadd.s32 %v2934_v9, %v1075_v10 }
 0x23f   : > { %1876 = vmatprep.subr.bf16.mxu0 %v2249_v36  ;;  %v2149_v34 = vpop.eup %2148  ;;  %v3199_v0 = vsel %vm1123_vm0, %v2147_v54, 0.0  ;;  %v1174_v17 = vmul.f32 10.0, %v3194_v40  ;;  %vm1128_vm4 = vcmp.lt.s32.totalorder %v1103_v1, 200 }
 0x240   : > { %v1195_v32 = vceil.f32 %v1170_v46  ;;  %v3207_v2 = vsel %vm1126_vm3, %v2149_v34, 0.0  ;;  %v1173_v50 = vmul.f32 10.0, %v3199_v0  ;;  %vm1127_vm9 = vcmp.lt.s32.totalorder %v1102_v24, 200 }
 0x241   : > { %v448_v3 = vpop.xlane.xlu1 %447  ;;  %v1199_v55 = vceil.f32 %v1174_v17  ;;  %v1176_v33 = vmul.f32 10.0, %v3207_v2 }
 0x242   : > { %2160 = vrcp.f32 %v448_v3  ;;  %v1791_v7 = vadd.f32 -1.0, %v1195_v32  ;;  %v1198_v31 = vceil.f32 %v1173_v50 }
 0x243   : > { %2162 = vrcp.f32 %v3156_v16  ;;  %v1077_v16 = vadd.s32 176, %v2925_v41  ;;  %v1795_v63 = vadd.f32 -1.0, %v1199_v55  ;;  %v1201_v26 = vceil.f32 %v1176_v33 }
 0x244   : > { %v2151_v35 = vpop.eup %2150  ;;  %v1920_v57 = vtrunc.f32 %v1791_v7  ;;  %2164 = vrcp.f32 %v475_v18  ;;  %v1079_v18 = vadd.s32 192, %v2925_v41  ;;  %v1794_v3 = vadd.f32 -1.0, %v1198_v31 }
 0x245   : > { %v2153_v5 = vpop.eup %2152  ;;  %v3202_v56 = vsel %vm1121_vm1, %v2151_v35, 0.0  ;;  %v1104_v13 = vadd.s32 %v2934_v9, %v1077_v16  ;;  %v1928_v49 = vtrunc.f32 %v1795_v63  ;;  %v1797_v35 = vadd.f32 -1.0, %v1201_v26 }
 0x246   : > { %v1921_v20 = vcvt.f32.s32 %v1920_v57  ;;  %v1171_v38 = vmul.f32 10.0, %v3202_v56  ;;  %v2155_v8 = vpop.eup %2154  ;;  %v3215_v61 = vsel %vm1125_vm2, %v2153_v5, 0.0  ;;  %v1106_v41 = vadd.s32 %v2934_v9, %v1079_v18 }
 0x247   : > { %v2157_v43 = vpop.eup %2156  ;;  %v1175_v62 = vmul.f32 10.0, %v3215_v61  ;;  %v3223_v30 = vsel %vm1128_vm4, %v2155_v8, 0.0  ;;  %vm1129_vm11 = vcmp.lt.s32.totalorder %v1104_v13, 200  ;;  %v1926_v24 = vtrunc.f32 %v1794_v3 }
 0x248   : > { %vm1270_vm6 = vcmp.eq.s32.totalorder %v1921_v20, %v3579_v6  ;;  %v1196_v39 = vceil.f32 %v1171_v38  ;;  %v2159_v15 = vpop.eup %2158  ;;  %v3228_v28 = vsel %vm1127_vm9, %v2157_v43, 0.0  ;;  %v1178_v54 = vmul.f32 10.0, %v3223_v30 }
 0x249   : > { %vm1877_vm7 = vmpackc.low %vm1270_vm6, %vm1269_vm5  ;;  %v1200_v23 = vceil.f32 %v1175_v62  ;;  %v3232_v10 = vsel %vm1130_vm10, %v2159_v15, 0.0  ;;  %v1177_v1 = vmul.f32 10.0, %v3228_v28  ;;  %vm1131_vm12 = vcmp.lt.s32.totalorder %v1106_v41, 200 }
 0x24a   : > { %1878 = vmatpush1.bf16.msk.msra.mxu0 %vm1877_vm7, %v2251_v12  ;;  %v1792_v48 = vadd.f32 -1.0, %v1196_v39  ;;  %v1203_v5 = vceil.f32 %v1178_v54  ;;  %v1180_v47 = vmul.f32 10.0, %v3232_v10  ;;  %v1929_v4 = vcvt.f32.s32 %v1928_v49 }
 0x24b   : > { %1879 = vmatprep.subr.bf16.mxu0 %v2249_v36  ;;  %v1796_v20 = vadd.f32 -1.0, %v1200_v23  ;;  %v1202_v50 = vceil.f32 %v1177_v1  ;;  %v1932_v8 = vtrunc.f32 %v1797_v35  ;;  %v1927_v13 = vcvt.f32.s32 %v1926_v24 }
 0x24c   : > { %v2161_v46 = vpop.eup %2160  ;;  %v1922_v34 = vtrunc.f32 %v1792_v48  ;;  %v1799_v55 = vadd.f32 -1.0, %v1203_v5  ;;  %v1205_v33 = vceil.f32 %v1180_v47  ;;  %vm1274_vm0 = vcmp.eq.s32.totalorder %v1929_v4, %v3579_v6 }
 0x24d   : > { %v3226_v44 = vsel %vm1122_vm8, %v2161_v46, 0.0  ;;  %v2163_v32 = vpop.eup %2162  ;;  %v1930_v15 = vtrunc.f32 %v1796_v20  ;;  %v1798_v31 = vadd.f32 -1.0, %v1202_v50  ;;  %v1933_v46 = vcvt.f32.s32 %v1932_v8 }
 0x24e   : > { %v1172_v19 = vmul.f32 10.0, %v3226_v44  ;;  %v3236_v11 = vsel %vm1129_vm11, %v2163_v32, 0.0  ;;  %v2165_v17 = vpop.eup %2164  ;;  %v1923_v38 = vcvt.f32.s32 %v1922_v34  ;;  %v1936_v48 = vtrunc.f32 %v1799_v55 }
 0x24f   : > { %v1179_v9 = vmul.f32 10.0, %v3236_v11  ;;  %v3240_v43 = vsel %vm1131_vm12, %v2165_v17, 0.0  ;;  %v1801_v63 = vadd.f32 -1.0, %v1205_v33  ;;  %vm1273_vm1 = vcmp.eq.s32.totalorder %v1927_v13, %v3579_v6 }
 0x250   : > { %v1197_v7 = vceil.f32 %v1172_v19  ;;  %vm1271_vm13 = vcmp.eq.s32.totalorder %v1923_v38, %v3579_v6  ;;  %v1181_v18 = vmul.f32 10.0, %v3240_v43  ;;  %v1931_v26 = vcvt.f32.s32 %v1930_v15  ;;  %vm1883_vm2 = vmpackc.low %vm1274_vm0, %vm1273_vm1 }
 0x251   : > { %v1204_v62 = vceil.f32 %v1179_v9  ;;  %v1934_v32 = vtrunc.f32 %v1798_v31  ;;  %vm1276_vm3 = vcmp.eq.s32.totalorder %v1933_v46, %v3579_v6  ;;  %v1937_v3 = vcvt.f32.s32 %v1936_v48 }
 0x252   : > { %v1793_v57 = vadd.f32 -1.0, %v1197_v7  ;;  %v1206_v54 = vceil.f32 %v1181_v18  ;;  %vm1332_vm4 = vcmp.eq.s32.totalorder %v3579_v6, 0  ;;  %v1940_v23 = vtrunc.f32 %v1801_v63 }
 0x253   : > { %v1800_v19 = vadd.f32 -1.0, %v1204_v62  ;;  %vm1275_vm5 = vcmp.eq.s32.totalorder %v1931_v26, %v3579_v6  ;;  %v1935_v41 = vcvt.f32.s32 %v1934_v32  ;;  %v3255_v1 = vsel %vm1332_vm4, 1.0, %v2252_v59 }
 0x254   : > { %v1924_v16 = vtrunc.f32 %v1793_v57  ;;  %vm1886_vm6 = vmpackc.low %vm1276_vm3, %vm1275_vm5  ;;  %vm1334_vm7 = vcmp.eq.s32.totalorder %v3579_v6, 1  ;;  %vm1485_vm8 = vcmp.eq.s32.totalorder %v3579_v6, 2  ;;  %v1802_v49 = vadd.f32 -1.0, %v1206_v54 }
 0x255   : > { %v1938_v7 = vtrunc.f32 %v1800_v19  ;;  %vm1278_vm9 = vcmp.eq.s32.totalorder %v1937_v3, %v3579_v6  ;;  %v1941_v5 = vcvt.f32.s32 %v1940_v23  ;;  %vm1277_vm10 = vcmp.eq.s32.totalorder %v1935_v41, %v3579_v6 }
 0x256   : > { %v1925_v39 = vcvt.f32.s32 %v1924_v16  ;;  %vm1889_vm11 = vmpackc.low %vm1278_vm9, %vm1277_vm10  ;;  %v1942_v38 = vtrunc.f32 %v1802_v49  ;;  %v2253_v13 = vmov 1.0   ;;  %vm1575_vm0 = vcmask 588800  }
 0x257   : > { %v1939_v17 = vcvt.f32.s32 %v1938_v7  ;;  %vm1280_vm12 = vcmp.eq.s32.totalorder %v1941_v5, %v3579_v6 }
 0x258   : > { %vm1272_vm14 = vcmp.eq.s32.totalorder %v1925_v39, %v3579_v6  ;;  %v1943_v9 = vcvt.f32.s32 %v1942_v38 }
 0x259   : > { %vm1880_vm15 = vmpackc.low %vm1272_vm14, %vm1271_vm13  ;;  %vm1279_vm13 = vcmp.eq.s32.totalorder %v1939_v17, %v3579_v6 }
 0x25a   : > { %1881 = vmatpush1.bf16.msk.msra.mxu0 %vm1880_vm15, %v2251_v12  ;;  %vm1892_vm14 = vmpackc.low %vm1280_vm12, %vm1279_vm13  ;;  %vm1281_vm15 = vcmp.eq.s32.totalorder %v1943_v9, %v3579_v6 }
 0x25b   : > { %1882 = vmatprep.subr.bf16.mxu0 %v2249_v36 }
 0x25e   : > { %1884 = vmatpush1.bf16.msk.msra.mxu0 %vm1883_vm2, %v2251_v12 }
 0x25f   : > { %1885 = vmatprep.subr.bf16.mxu0 %v2249_v36 }
 0x261   : > { %v2007_v34 = vpop.permute.xlu0 %2006 }
 0x262   : > { %v2009_v35 = vunpack.i.h.bf16 %v2007_v34  ;;  %v2008_v57 = vunpack.i.l.bf16 %v2007_v34  ;;  %1887 = vmatpush1.bf16.msk.msra.mxu0 %vm1886_vm6, %v2251_v12 }
 0x263   : > { %1888 = vmatprep.subr.bf16.mxu0 %v2249_v36 }
 0x264   : > { %v1460_v47 = vsel %vm1334_vm7, %v2008_v57, %v3255_v1  ;;  %v1461_v50 = vsel %vm1334_vm7, %v2009_v35, %v3255_v1 }
 0x265   : > { %v2013_v24 = vpop.permute.xlu1 %2012  ;;  %v1486_v20 = vsel %vm1485_vm8, %v2956_v14, %v1460_v47  ;;  %v1487_v14 = vsel %vm1485_vm8, %v2954_v52, %v1461_v50 }
 0x266   : > { %v2014_v16 = vunpack.i.l.bf16 %v2013_v24  ;;  %1890 = vmatpush1.bf16.msk.msra.mxu0 %vm1889_vm11, %v2251_v12  ;;  %1511 = vxpose.xlu1.b32.start [1/16] (narrow) %v1486_v20, 8  ;;  %v2015_v4 = vunpack.i.h.bf16 %v2013_v24 }
 0x267   : > { %1891 = vmatprep.subr.bf16.mxu0 %v2249_v36 }
 0x268   : > { %v1462_v8 = vsel %vm1334_vm7, %v2014_v16, %v3255_v1 }
 0x269   : > { %v2018_v39 = vpop.permute.xlu0 %2017  ;;  %v1488_v55 = vsel %vm1485_vm8, %v2966_v58, %v1462_v8 }
 0x26a   : > { %1893 = vmatpush1.bf16.msk.msra.mxu0 %vm1892_vm14, %v2251_v12  ;;  %1512 = vxpose.xlu1.b32.cont [2/16] (narrow) %v1487_v14, 8  ;;  %v2019_v52 = vunpack.i.l.bf16 %v2018_v39  ;;  %v1463_v12 = vsel %vm1334_vm7, %v2015_v4, %v3255_v1  ;;  %v2020_v62 = vunpack.i.h.bf16 %v2018_v39 }
 0x26b   : > { %1627 = vmatprep.subr.mxu0 %v2252_v59  ;;  %v1489_v58 = vsel %vm1485_vm8, %v2962_v29, %v1463_v12 }
 0x26c   : > { %v1464_v46 = vsel %vm1334_vm7, %v2019_v52, %v3255_v1  ;;  %v1465_v19 = vsel %vm1334_vm7, %v2020_v62, %v3255_v1 }
 0x26d   : > { %v2023_v36 = vpop.permute.xlu1 %2022  ;;  %v1490_v29 = vsel %vm1485_vm8, %v3096_v25, %v1464_v46  ;;  %v1491_v25 = vsel %vm1485_vm8, %v3116_v53, %v1465_v19 }
 0x26e   : > { %v2025_v33 = vunpack.i.h.bf16 %v2023_v36  ;;  %1852 = vmatpush1.msk.msra.mxu0 %vm1281_vm15, %v2253_v13  ;;  %1513 = vxpose.xlu1.b32.cont [3/16] (narrow) %v1488_v55, 8  ;;  %v2024_v26 = vunpack.i.l.bf16 %v2023_v36 }
 0x270   : > { %v1476_v59 = vsel %vm1334_vm7, %v2025_v33, %v3255_v1  ;;  %v1466_v7 = vsel %vm1334_vm7, %v2024_v26, %v3255_v1 }
 0x271   : > { %v2028_v15 = vpop.permute.xlu0 %2027  ;;  %v1502_v31 = vsel %vm1485_vm8, %v3199_v0, %v1476_v59  ;;  %v1492_v53 = vsel %vm1485_vm8, %v3113_v21, %v1466_v7 }
 0x272   : > { %v2030_v18 = vunpack.i.h.bf16 %v2028_v15  ;;  %1543 = vxpose.xlu0.b32.start [1/9] (short) (narrow) %v1502_v31, 8  ;;  %1514 = vxpose.xlu1.b32.cont [4/16] (narrow) %v1489_v58, 8  ;;  %v2029_v23 = vunpack.i.l.bf16 %v2028_v15 }
 0x274   : > { %v1477_v48 = vsel %vm1334_vm7, %v2030_v18, %v3255_v1  ;;  %v1467_v5 = vsel %vm1334_vm7, %v2029_v23, %v3255_v1 }
 0x275   : > { %v2033_v63 = vpop.permute.xlu0 %2032  ;;  %v1503_v0 = vsel %vm1485_vm8, %v3194_v40, %v1477_v48  ;;  %v1493_v21 = vsel %vm1485_vm8, %v3123_v37, %v1467_v5 }
 0x276   : > { %v2035_v32 = vunpack.i.h.bf16 %v2033_v63  ;;  %1544 = vxpose.xlu0.b32.cont [2/9] (short) (narrow) %v1503_v0, 8  ;;  %1515 = vxpose.xlu1.b32.cont [5/16] (narrow) %v1490_v29, 8  ;;  %v2034_v35 = vunpack.i.l.bf16 %v2033_v63 }
 0x278   : > { %v1478_v54 = vsel %vm1334_vm7, %v2035_v32, %v3255_v1  ;;  %v1468_v38 = vsel %vm1334_vm7, %v2034_v35, %v3255_v1 }
 0x279   : > { %v2038_v3 = vpop.permute.xlu0 %2037  ;;  %v1504_v40 = vsel %vm1485_vm8, %v3215_v61, %v1478_v54  ;;  %v1494_v37 = vsel %vm1485_vm8, %v3129_v22, %v1468_v38 }
 0x27a   : > { %v2040_v41 = vunpack.i.h.bf16 %v2038_v3  ;;  %1545 = vxpose.xlu0.b32.cont [3/9] (short) (narrow) %v1504_v40, 8  ;;  %1516 = vxpose.xlu1.b32.cont [6/16] (narrow) %v1491_v25, 8  ;;  %v2039_v24 = vunpack.i.l.bf16 %v2038_v3 }
 0x27c   : > { %v1479_v34 = vsel %vm1334_vm7, %v2040_v41, %v3255_v1  ;;  %v1469_v4 = vsel %vm1334_vm7, %v2039_v24, %v3255_v1 }
 0x27d   : > { %v2043_v49 = vpop.permute.xlu0 %2042  ;;  %v1505_v61 = vsel %vm1485_vm8, %v3207_v2, %v1479_v34  ;;  %v1495_v22 = vsel %vm1485_vm8, %v3137_v42, %v1469_v4 }
 0x27e   : > { %v2045_v57 = vunpack.i.h.bf16 %v2043_v49  ;;  %1546 = vxpose.xlu0.b32.cont [4/9] (short) (narrow) %v1505_v61, 8  ;;  %1517 = vxpose.xlu1.b32.cont [7/16] (narrow) %v1492_v53, 8  ;;  %v2044_v14 = vunpack.i.l.bf16 %v2043_v49 }
 0x280   : > { %v1480_v47 = vsel %vm1334_vm7, %v2045_v57, %v3255_v1  ;;  %v1470_v52 = vsel %vm1334_vm7, %v2044_v14, %v3255_v1 }
 0x281   : > { %v2048_v17 = vpop.permute.xlu1 %2047  ;;  %v1506_v2 = vsel %vm1485_vm8, %v3228_v28, %v1480_v47  ;;  %v1496_v42 = vsel %vm1485_vm8, %v3149_v45, %v1470_v52 }
 0x282   : > { %v2050_v20 = vunpack.i.h.bf16 %v2048_v17  ;;  %1547 = vxpose.xlu0.b32.cont [5/9] (short) (narrow) %v1506_v2, 8  ;;  %1518 = vxpose.xlu1.b32.cont [8/16] (narrow) %v1493_v21, 8  ;;  %v2049_v36 = vunpack.i.l.bf16 %v2048_v17 }
 0x284   : > { %v1481_v16 = vsel %vm1334_vm7, %v2050_v20, %v3255_v1  ;;  %v1471_v15 = vsel %vm1334_vm7, %v2049_v36, %v3255_v1 }
 0x285   : > { %v2053_v50 = vpop.permute.xlu0 %2052  ;;  %v1507_v28 = vsel %vm1485_vm8, %v3223_v30, %v1481_v16  ;;  %v1497_v45 = vsel %vm1485_vm8, %v3160_v27, %v1471_v15 }
 0x286   : > { %v2055_v9 = vunpack.i.h.bf16 %v2053_v50  ;;  %1548 = vxpose.xlu0.b32.cont [6/9] (short) (narrow) %v1507_v28, 8  ;;  %1519 = vxpose.xlu1.b32.cont [9/16] (narrow) %v1494_v37, 8  ;;  %v2054_v12 = vunpack.i.l.bf16 %v2053_v50 }
 0x288   : > { %v1482_v8 = vsel %vm1334_vm7, %v2055_v9, %v3255_v1  ;;  %v1472_v62 = vsel %vm1334_vm7, %v2054_v12, %v3255_v1 }
 0x289   : > { %v2058_v39 = vpop.permute.xlu1 %2057  ;;  %v1508_v30 = vsel %vm1485_vm8, %v3236_v11, %v1482_v8  ;;  %v1498_v18 = vsel %vm1485_vm8, %v3162_v51, %v1472_v62 }
 0x28a   : > { %v2060_v55 = vunpack.i.h.bf16 %v2058_v39  ;;  %1549 = vxpose.xlu0.b32.cont [7/9] (short) (narrow) %v1508_v30, 8  ;;  %1520 = vxpose.xlu1.b32.cont [10/16] (narrow) %v1495_v22, 8  ;;  %v2059_v58 = vunpack.i.l.bf16 %v2058_v39 }
 0x28c   : > { %v1483_v33 = vsel %vm1334_vm7, %v2060_v55, %v3255_v1 }
 0x28d   : > { %v2063_v13 = vpop.permute.xlu0 %2062  ;;  %v1509_v11 = vsel %vm1485_vm8, %v3232_v10, %v1483_v33  ;;  %v1413_v63 = vpop.permute.xlu1 %1412 }
 0x28e   : > { %v2065_v59 = vunpack.i.h.bf16 %v2063_v13  ;;  %1550 = vxpose.xlu0.b32.cont [8/9] (short) (narrow) %v1509_v11, 8  ;;  %1521 = vxpose.xlu1.b32.cont [11/16] (narrow) %v1496_v42, 8  ;;  %v2064_v46 = vunpack.i.l.bf16 %v2063_v13  ;;  %v1475_v0 = vsel %vm1334_vm7, %v1413_v63, %v3255_v1 }
 0x290   : > { %v1484_v31 = vsel %vm1334_vm7, %v2065_v59, %v3255_v1  ;;  %v1474_v48 = vsel %vm1334_vm7, %v2064_v46, %v3255_v1 }
 0x291   : > { %v1510_v10 = vsel %vm1485_vm8, %v3240_v43, %v1484_v31  ;;  %v1473_v43 = vsel %vm1334_vm7, %v2059_v58, %v3255_v1  ;;  %v1500_v51 = vsel %vm1485_vm8, %v3202_v56, %v1474_v48 }
 0x292   : > { %1551 = vxpose.xlu0.b32.end [9/9] (short) (narrow) %v1510_v10, 8  ;;  %1522 = vxpose.xlu1.b32.cont [12/16] (narrow) %v1497_v45, 8  ;;  %v1499_v27 = vsel %vm1485_vm8, %v3180_v60, %v1473_v43  ;;  %v1501_v60 = vsel %vm1485_vm8, %v3226_v44, %v1475_v0 }
 0x296   : > { %1523 = vxpose.xlu1.b32.cont [13/16] (narrow) %v1498_v18, 8 }
 0x29a   : > { %1524 = vxpose.xlu1.b32.cont [14/16] (narrow) %v1499_v27, 8 }
 0x29e   : > { %1525 = vxpose.xlu1.b32.cont [15/16] (narrow) %v1500_v51, 8 }
 0x2a2   : > { %1526 = vxpose.xlu1.b32.end [16/16] (narrow) %v1501_v60, 8 }
 0x2e6   : > { %v1527_v29 = vpop.trf.xlu1 }
 0x2f2   : > { %v1559_v26 = vpop.trf.xlu0 }
 0x2f3   : > { %1853 = vmatprep.mubr.msk.f32.mxu0 %vm1575_vm0, %v1559_v26 }
 0x2f4   : > { %1644 = vmatmul.mubr.f32.vlgmr.msra.gmra.mrb[0].mxu0 %v1527_v29 }
 0x3c7   : > { %v1645_v56 = vpop.f32.mrb[0].mxu0 }
 0x3c8   : > { %v1647_v32 = vpop.f32.mrb[1].mxu0  ;;  %1651 = vst [vmem:[%s195_s8] sm:$0xff] %v1645_v56 }
 0x3c9   : > { %2182 = shalt.err (!%p2179_p6)
}
 0x3ca   : > { %s2183_s27 = scalar_lea.hbm %s3425_s20, 128  ;;  %s2187_s30 = scalar_lea.hbm %s3474_s2, 256 }
 0x3cb   : > { %p2184_p7 = scmp.ne.s32.totalorder %s3425_s20, %s2183_s27  ;;  %p2188_p11 = scmp.lt.u32.totalorder %s3425_s20, %s3474_s2 }
 0x3cc   : > { %p2189_p12 = scmp.lt.u32.totalorder %s2187_s30, %s2183_s27  ;;  %p2191_p0 = scmp.lt.u32.totalorder %s2183_s27, %s3425_s20 }
 0x3cd   : > { %p2185_p9 = pnand %p2184_p7, %p2310_p4 }
 0x3ce   : > { %p2190_p13 = por %p2189_p12, %p2188_p11 }
 0x3cf   : > { %p2186_p10 = pneg %p2185_p9 }
 0x3d0   : > { %p2192_p1 = por %p2191_p0, %p2190_p13 }
 0x3d2   : > { %p2193_p2 = pnand %p2192_p1, %p2186_p10 }
 0x3d4   : > { %2196 = shalt.err (!%p2193_p2)
}
 0x3d5   : > { %1944 = dma.vmem_to_hbm [thread:$0]  (%p2310_p4), %s3427_s15, 128, %s3425_s20, %s1653_s23  }
 0x3d6 PF: > { %p1950_p3 = scmp.ge.s32.totalorder %s2247_s14, 2  ;;  %s1678_s5 = sand.u32 1, %s2227_s9  }
 0x3d7   : > { %s1679_s6 = scalar_lea.sflag [#allocation3], %s1678_s5 }
 0x3d8   : > { %p1947_p5 = pnand %p1950_p3, %p2317_p8 }
 0x3da   : > { %2222 = dma.done.wait (!%p1947_p5), %s1679_s6, 128  }
 0x3db   : > { %2224 = vsyncadd (!%p1947_p5), %s1679_s6, 4294967168  ;;  %s15_s14 = sadd.s32 1, %s2247_s14   ;;  %s3585_s9 = smov %s2231_s10 }
 0x3dc   : > { %p12_p6 = scmp.ge.s32.totalorder %s15_s14, 4   ;;  %s3586_s10 = smov %s2235_s11 }
 0x3dd   : > { %s3587_s11 = smov %s2323_s22  ;;  %s3588_s12 = smov %s2243_s13 }
 0x3de   : > { %s3589_s13 = smov %s3591_s17  ;;  %14 = sbr.rel (!%p12_p6) target bundleno = 4 (0x4), region = 70 }
 0x3e5   :  { %1684 = vsyncpa [#allocation3], 1 }
 0x3e6   :  { %1686 = vsyncpa [#allocation3 + $0x1], 1 }

</bundles_post_ra>
